<compile_context>
chip_gen: v7x
topology: tpu7x:2x2x1
jax: 0.10.0
libtpu: 0.0.40
codegen_flags: <defaults>
</compile_context>

<pallas_src>
import jax
import jax.numpy as jnp
from jax.experimental import pallas as pl
from jax.experimental.pallas import tpu as pltpu

BN_EPS = 1e-5
VMEM_LIMIT_BYTES = 32 * 1024 * 1024    # <= v7x default scoped VMEM; ample on v5e/v6e.
VMEM_BUDGET_BYTES = 20 * 1024 * 1024   # headroom below the limit for pallas internals.


# --------------------------------------------------------------------------------------
# Pass 1: per-chunk BN batch statistics -> partial [sum(x); sum(x^2)] per channel.
# Grid (2, n_half): axis 0 "parallel" (megacore shard on v7x), axis 1 "arbitrary".
# --------------------------------------------------------------------------------------
def bn_stats_kernel(x_ref, part_ref, acc_ref):
    # x_ref: [4, TILE_P, Cin] bf16; part_ref: [1, 2, Cin] f32; acc_ref: [2, Cin] f32.
    i = pl.program_id(1)

    @pl.when(i == 0)
    def _init():
        acc_ref[...] = jnp.zeros_like(acc_ref)

    # Upcast to f32 for the accumulation (accuracy); elementwise cost is hidden
    # behind the HBM-bound DMA stream.
    x0 = x_ref[0].astype(jnp.float32)
    x1 = x_ref[1].astype(jnp.float32)
    x2 = x_ref[2].astype(jnp.float32)
    x3 = x_ref[3].astype(jnp.float32)
    total = (x0 + x1) + (x2 + x3)                              # [TILE_P, Cin]
    sq = (x0 * x0 + x1 * x1) + (x2 * x2 + x3 * x3)             # [TILE_P, Cin]
    acc_ref[0:1, :] += jnp.sum(total, axis=0, keepdims=True)   # sum(x)
    acc_ref[1:2, :] += jnp.sum(sq, axis=0, keepdims=True)      # sum(x^2)

    @pl.when(i == pl.num_programs(1) - 1)
    def _finalize():
        part_ref[0] = acc_ref[...]


# --------------------------------------------------------------------------------------
# Pass 2: normalize+ReLU per offset (bf16), sum offsets, one bf16 MXU matmul
# (1x1 conv with the AvgPool 0.25 folded into the weights).
# --------------------------------------------------------------------------------------
def norm_relu_conv_pool_kernel(x_ref, ab_ref, w_ref, o_ref):
    # x_ref: [4, TILE_P, Cin] bf16, ab_ref: [2, Cin] bf16, w_ref: [Cin, Cout_pad] bf16.
    a = ab_ref[0:1, :]                                         # [1, Cin] bf16
    b = ab_ref[1:2, :]
    y_sum = (jnp.maximum(x_ref[0] * a + b, 0.0)
             + jnp.maximum(x_ref[1] * a + b, 0.0)
             + jnp.maximum(x_ref[2] * a + b, 0.0)
             + jnp.maximum(x_ref[3] * a + b, 0.0))             # [TILE_P, Cin] bf16
    o_ref[...] = jnp.dot(y_sum, w_ref[...],
                         preferred_element_type=jnp.float32).astype(o_ref.dtype)


def _pick_tile_p(P, cin, cout_pad, budget=VMEM_BUDGET_BYTES):
    """Largest TILE_P whose pass-2 VMEM footprint fits the budget (bf16 slab/output)."""
    fixed = 2 * cin * cout_pad * 2 + 2 * 2 * cin * 2           # w + ab, double buffered
    tile = 8
    for tp in (512, 256, 128, 64, 32, 16, 8):
        per = 2 * (4 * tp * cin * 2) + 2 * (tp * cout_pad * 2)  # x tile + out tile, 2 bufs
        if fixed + per <= budget:
            tile = tp
            break
    # Don't pick a tile absurdly larger than the problem (limits zero-padding waste).
    while tile > 8 and tile // 2 >= P:
        tile //= 2
    return tile


def transition_forward(x_nchw, gamma, beta, w, *, tile_p=None):
    """Pallas implementation of Transition.forward (training-mode BN).

    x_nchw: [N, Cin, H, W]; gamma/beta: [Cin]; w: [Cin, Cout] (1x1 conv, no bias).
    Returns [N, Cout, H//2, W//2] f32.
    """
    N, Cin, H, W = x_nchw.shape
    Cout = w.shape[1]
    assert H % 2 == 0 and W % 2 == 0, "even spatial dims required (AvgPool2d(2))"
    Ho, Wo = H // 2, W // 2
    P = N * Ho * Wo

    Cout_pad = ((Cout + 127) // 128) * 128
    TILE_P = tile_p if tile_p is not None else _pick_tile_p(P, Cin, Cout_pad)
    # Pad P to a multiple of 2*TILE_P: keeps 2 equal chunks for the dual-core stats
    # pass and full-size tiles everywhere (pad rows are zeros -> transparent to stats).
    P_pad = ((P + 2 * TILE_P - 1) // (2 * TILE_P)) * (2 * TILE_P)
    n_blocks = P_pad // TILE_P
    n_half = n_blocks // 2

    # ---- layout glue: ONE transpose NCHW -> bf16 offset-major slab [4, P, Cin] ----
    x6 = x_nchw.reshape(N, Cin, Ho, 2, Wo, 2)                  # free reshape
    x_packed = jnp.transpose(x6, (3, 5, 0, 2, 4, 1)).reshape(4, P, Cin)
    x_packed = x_packed.astype(jnp.bfloat16)
    if P_pad != P:
        x_packed = jnp.pad(x_packed, ((0, 0), (0, P_pad - P), (0, 0)))

    # Lane-dense, MXU-aligned weights: fold AvgPool 1/4 (exact), pad Cout to 128n, bf16.
    w_scaled = (w.astype(jnp.float32) * 0.25).astype(jnp.bfloat16)
    if Cout_pad != Cout:
        w_scaled = jnp.pad(w_scaled, ((0, 0), (0, Cout_pad - Cout)))

    x_spec = pl.BlockSpec((4, TILE_P, Cin), lambda c, i: (0, c * n_half + i, 0))

    # ---- pass 1: BN batch statistics (2-way core-parallel partial sums) ----
    part = pl.pallas_call(
        bn_stats_kernel,
        out_shape=jax.ShapeDtypeStruct((2, 2, Cin), jnp.float32),
        grid_spec=pltpu.PrefetchScalarGridSpec(
            num_scalar_prefetch=0,
            grid=(2, n_half),
            in_specs=[x_spec],
            out_specs=pl.BlockSpec((1, 2, Cin), lambda c, i: (c, 0, 0)),
            scratch_shapes=[pltpu.VMEM((2, Cin), jnp.float32)]),
        compiler_params=pltpu.CompilerParams(
            dimension_semantics=("parallel", "arbitrary"),
            vmem_limit_bytes=VMEM_LIMIT_BYTES),
    )(x_packed)

    # ---- tiny fold (plain JAX, KB-scale): partial sums -> per-channel scale/shift ----
    s = part[0, 0] + part[1, 0]                                # sum(x)     [Cin]
    ss = part[0, 1] + part[1, 1]                               # sum(x^2)   [Cin]
    count = float(N * H * W)                                   # real element count
    mean = s / count
    var = ss / count - mean * mean                             # biased variance
    a = gamma.astype(jnp.float32) * jax.lax.rsqrt(var + BN_EPS)
    b = beta.astype(jnp.float32) - mean * a
    ab = jnp.stack([a, b], axis=0).astype(jnp.bfloat16)        # [2, Cin]

    # ---- pass 2: normalize + ReLU + 1x1 conv + 2x2 avg pool (bf16 out) ----
    out = pl.pallas_call(
        norm_relu_conv_pool_kernel,
        out_shape=jax.ShapeDtypeStruct((P_pad, Cout_pad), jnp.bfloat16),
        grid_spec=pltpu.PrefetchScalarGridSpec(
            num_scalar_prefetch=0,
            grid=(n_blocks,),
            in_specs=[pl.BlockSpec((4, TILE_P, Cin), lambda i: (0, i, 0)),
                      pl.BlockSpec((2, Cin), lambda i: (0, 0)),
                      pl.BlockSpec((Cin, Cout_pad), lambda i: (0, 0))],
            out_specs=pl.BlockSpec((TILE_P, Cout_pad), lambda i: (i, 0))),
        compiler_params=pltpu.CompilerParams(
            dimension_semantics=("parallel",),
            vmem_limit_bytes=VMEM_LIMIT_BYTES),
    )(x_packed, ab, w_scaled)

    # Slice off pad rows / pad channels; back to NCHW f32 (matches the PyTorch module).
    out = out[:P, :Cout].astype(jnp.float32)
    return jnp.transpose(out.reshape(N, Ho, Wo, Cout), (0, 3, 1, 2))


def transition_ref(x_nchw, gamma, beta, w):
    """Pure-JAX f32 reference matching PyTorch semantics (training-mode BN)."""
    mean = jnp.mean(x_nchw, axis=(0, 2, 3), keepdims=True)
    var = jnp.mean((x_nchw - mean) ** 2, axis=(0, 2, 3), keepdims=True)
    xhat = (x_nchw - mean) / jnp.sqrt(var + BN_EPS)
    y = jnp.maximum(xhat * gamma[None, :, None, None] + beta[None, :, None, None], 0.0)
    z = jnp.einsum('nchw,cd->ndhw', y, w)                      # 1x1 conv, no bias
    N, D, H, W = z.shape
    return z.reshape(N, D, H // 2, 2, W // 2, 2).mean(axis=(3, 5))


if __name__ == "__main__":
    key = jax.random.PRNGKey(0)
    k1, k2, k3, k4 = jax.random.split(key, 4)

    N, Cin, H, W, Cout = 2, 4, 16, 16, 8
    x = jax.random.normal(k1, (N, Cin, H, W), dtype=jnp.float32)

    # Conv2d(in_planes, out_planes, 1, bias=False) weight stored as [Cin, Cout]
    # (== PyTorch [Cout, Cin, 1, 1] squeezed + transposed), PyTorch-style fan_in bound.
    bound = 1.0 / (Cin ** 0.5)
    w = jax.random.uniform(k2, (Cin, Cout), minval=-bound, maxval=bound,
                           dtype=jnp.float32)

    # BatchNorm2d affine params (perturbed from defaults so the check is non-trivial).
    gamma = 1.0 + 0.1 * jax.random.normal(k3, (Cin,), dtype=jnp.float32)
    beta = 0.1 * jax.random.normal(k4, (Cin,), dtype=jnp.float32)

    fwd = jax.jit(transition_forward)
    out = jax.block_until_ready(fwd(x, gamma, beta, w))
    ref = transition_ref(x, gamma, beta, w)

    assert out.shape == (N, Cout, H // 2, W // 2), out.shape
    max_err = float(jnp.max(jnp.abs(out - ref)))
    # bf16 slab + bf16 VPU/MXU pipeline -> relaxed tolerance vs the f32 reference.
    assert jnp.allclose(out, ref, atol=3e-2, rtol=3e-2), max_err
    print("KERNEL_OK")
</pallas_src>

<mosaic_0001>
module attributes {stable_mosaic.version = 11 : i64} {
  func.func @norm_relu_conv_pool_kernel(%arg0: i32, %arg1: memref<4x128x4xbf16, #tpu.memory_space<vmem>>, %arg2: memref<2x4xbf16, #tpu.memory_space<vmem>>, %arg3: memref<4x128xbf16, #tpu.memory_space<vmem>>, %arg4: memref<128x128xbf16, #tpu.memory_space<vmem>>) attributes {dimension_semantics = [#tpu.dimension_semantics<parallel>], iteration_bounds = array<i64: 2>, scalar_prefetch = 0 : i64, scratch_operands = 0 : i64, tpu.core_type = #tpu.core_type<tc>, window_params = [{transform_indices = @transform_0, window_bounds = array<i64: 4, 128, 4>}, {pipeline_mode = #tpu.pipeline_mode<synchronous>, transform_indices = @transform_1, window_bounds = array<i64: 2, 4>}, {pipeline_mode = #tpu.pipeline_mode<synchronous>, transform_indices = @transform_2, window_bounds = array<i64: 4, 128>}, {transform_indices = @transform_3, window_bounds = array<i64: 128, 128>}]} {
    %c0 = arith.constant 0 : index
    %c0_0 = arith.constant 0 : index
    %0 = vector.load %arg2[%c0, %c0_0] : memref<2x4xbf16, #tpu.memory_space<vmem>>, vector<1x4xbf16>
    %c1 = arith.constant 1 : index
    %c0_1 = arith.constant 0 : index
    %1 = vector.load %arg2[%c1, %c0_1] : memref<2x4xbf16, #tpu.memory_space<vmem>>, vector<1x4xbf16>
    %c0_2 = arith.constant 0 : index
    %c0_3 = arith.constant 0 : index
    %c0_4 = arith.constant 0 : index
    %2 = vector.load %arg1[%c0_2, %c0_3, %c0_4] : memref<4x128x4xbf16, #tpu.memory_space<vmem>>, vector<1x128x4xbf16>
    %3 = vector.shape_cast %2 : vector<1x128x4xbf16> to vector<128x4xbf16>
    %4 = vector.broadcast %0 : vector<1x4xbf16> to vector<128x4xbf16>
    %5 = arith.mulf %3, %4 : vector<128x4xbf16>
    %6 = vector.broadcast %1 : vector<1x4xbf16> to vector<128x4xbf16>
    %7 = arith.addf %5, %6 : vector<128x4xbf16>
    %cst = arith.constant 0.000000e+00 : bf16
    %8 = vector.broadcast %cst : bf16 to vector<128x4xbf16>
    %9 = arith.maximumf %7, %8 : vector<128x4xbf16>
    %c1_5 = arith.constant 1 : index
    %c0_6 = arith.constant 0 : index
    %c0_7 = arith.constant 0 : index
    %10 = vector.load %arg1[%c1_5, %c0_6, %c0_7] : memref<4x128x4xbf16, #tpu.memory_space<vmem>>, vector<1x128x4xbf16>
    %11 = vector.shape_cast %10 : vector<1x128x4xbf16> to vector<128x4xbf16>
    %12 = vector.broadcast %0 : vector<1x4xbf16> to vector<128x4xbf16>
    %13 = arith.mulf %11, %12 : vector<128x4xbf16>
    %14 = vector.broadcast %1 : vector<1x4xbf16> to vector<128x4xbf16>
    %15 = arith.addf %13, %14 : vector<128x4xbf16>
    %cst_8 = arith.constant 0.000000e+00 : bf16
    %16 = vector.broadcast %cst_8 : bf16 to vector<128x4xbf16>
    %17 = arith.maximumf %15, %16 : vector<128x4xbf16>
    %18 = arith.addf %9, %17 : vector<128x4xbf16>
    %c2 = arith.constant 2 : index
    %c0_9 = arith.constant 0 : index
    %c0_10 = arith.constant 0 : index
    %19 = vector.load %arg1[%c2, %c0_9, %c0_10] : memref<4x128x4xbf16, #tpu.memory_space<vmem>>, vector<1x128x4xbf16>
    %20 = vector.shape_cast %19 : vector<1x128x4xbf16> to vector<128x4xbf16>
    %21 = vector.broadcast %0 : vector<1x4xbf16> to vector<128x4xbf16>
    %22 = arith.mulf %20, %21 : vector<128x4xbf16>
    %23 = vector.broadcast %1 : vector<1x4xbf16> to vector<128x4xbf16>
    %24 = arith.addf %22, %23 : vector<128x4xbf16>
    %cst_11 = arith.constant 0.000000e+00 : bf16
    %25 = vector.broadcast %cst_11 : bf16 to vector<128x4xbf16>
    %26 = arith.maximumf %24, %25 : vector<128x4xbf16>
    %27 = arith.addf %18, %26 : vector<128x4xbf16>
    %c3 = arith.constant 3 : index
    %c0_12 = arith.constant 0 : index
    %c0_13 = arith.constant 0 : index
    %28 = vector.load %arg1[%c3, %c0_12, %c0_13] : memref<4x128x4xbf16, #tpu.memory_space<vmem>>, vector<1x128x4xbf16>
    %29 = vector.shape_cast %28 : vector<1x128x4xbf16> to vector<128x4xbf16>
    %30 = vector.broadcast %0 : vector<1x4xbf16> to vector<128x4xbf16>
    %31 = arith.mulf %29, %30 : vector<128x4xbf16>
    %32 = vector.broadcast %1 : vector<1x4xbf16> to vector<128x4xbf16>
    %33 = arith.addf %31, %32 : vector<128x4xbf16>
    %cst_14 = arith.constant 0.000000e+00 : bf16
    %34 = vector.broadcast %cst_14 : bf16 to vector<128x4xbf16>
    %35 = arith.maximumf %33, %34 : vector<128x4xbf16>
    %36 = arith.addf %27, %35 : vector<128x4xbf16>
    %c0_15 = arith.constant 0 : index
    %c0_16 = arith.constant 0 : index
    %37 = vector.load %arg3[%c0_15, %c0_16] : memref<4x128xbf16, #tpu.memory_space<vmem>>, vector<4x128xbf16>
    %cst_17 = arith.constant dense<0.000000e+00> : vector<128x128xf32>
    %38 = tpu.matmul %36, %37, %cst_17 {dimension_numbers = #tpu.dot_dimension_numbers<[1], [0], [0], [1], [0, 0, 1, 1], [], []>} : vector<128x4xbf16>, vector<4x128xbf16>, vector<128x128xf32> -> vector<128x128xf32>
    %39 = arith.truncf %38 : vector<128x128xf32> to vector<128x128xbf16>
    %c0_18 = arith.constant 0 : index
    %c0_19 = arith.constant 0 : index
    %40 = vector.load %arg4[%c0_18, %c0_19] : memref<128x128xbf16, #tpu.memory_space<vmem>>, vector<128x128xbf16>
    tpu.vector_store %arg4[%c0_18, %c0_19], %39 {strides = array<i32>} : memref<128x128xbf16, #tpu.memory_space<vmem>>, vector<128x128xbf16>,
    return
  }
  func.func @transform_0(%arg0: i32) -> (i32, i32, i32) {
    %c0_i32 = arith.constant 0 : i32
    %c0_i32_0 = arith.constant 0 : i32
    %c0_i32_1 = arith.constant 0 : i32
    return %c0_i32, %arg0, %c0_i32_0 : i32, i32, i32
  }
  func.func @transform_1(%arg0: i32) -> (i32, i32) {
    %c0_i32 = arith.constant 0 : i32
    %c0_i32_0 = arith.constant 0 : i32
    %c0_i32_1 = arith.constant 0 : i32
    return %c0_i32, %c0_i32_0 : i32, i32
  }
  func.func @transform_2(%arg0: i32) -> (i32, i32) {
    %c0_i32 = arith.constant 0 : i32
    %c0_i32_0 = arith.constant 0 : i32
    %c0_i32_1 = arith.constant 0 : i32
    return %c0_i32, %c0_i32_0 : i32, i32
  }
  func.func @transform_3(%arg0: i32) -> (i32, i32) {
    %c0_i32 = arith.constant 0 : i32
    %c0_i32_0 = arith.constant 0 : i32
    return %arg0, %c0_i32 : i32, i32
  }
}

module attributes {stable_mosaic.version = 11 : i64} {
  func.func @bn_stats_kernel(%arg0: i32, %arg1: i32, %arg2: memref<4x128x4xbf16, #tpu.memory_space<vmem>>, %arg3: memref<1x2x4xf32, #tpu.memory_space<vmem>>, %arg4: memref<2x4xf32, #tpu.memory_space<vmem>>) attributes {dimension_semantics = [#tpu.dimension_semantics<parallel>, #tpu.dimension_semantics<arbitrary>], iteration_bounds = array<i64: 2, 1>, scalar_prefetch = 0 : i64, scratch_operands = 1 : i64, tpu.core_type = #tpu.core_type<tc>, window_params = [{transform_indices = @transform_0, window_bounds = array<i64: 4, 128, 4>}, {transform_indices = @transform_1, window_bounds = array<i64: 1, 2, 4>}]} {
    %c0_i32 = arith.constant 0 : i32
    %0 = arith.cmpi eq, %arg1, %c0_i32 : i32
    %1 = arith.extui %0 : i1 to i32
    %c0_i32_0 = arith.constant 0 : i32
    %2 = arith.cmpi ne, %1, %c0_i32_0 : i32
    scf.if %2 {
      %cst_20 = arith.constant 0.000000e+00 : f32
      %38 = vector.broadcast %cst_20 : f32 to vector<2x4xf32>
      %c0_21 = arith.constant 0 : index
      %c0_22 = arith.constant 0 : index
      %39 = vector.load %arg4[%c0_21, %c0_22] : memref<2x4xf32, #tpu.memory_space<vmem>>, vector<2x4xf32>
      tpu.vector_store %arg4[%c0_21, %c0_22], %38 {strides = array<i32>} : memref<2x4xf32, #tpu.memory_space<vmem>>, vector<2x4xf32>,
    } else {
    }
    %c0 = arith.constant 0 : index
    %c0_1 = arith.constant 0 : index
    %c0_2 = arith.constant 0 : index
    %3 = vector.load %arg2[%c0, %c0_1, %c0_2] : memref<4x128x4xbf16, #tpu.memory_space<vmem>>, vector<1x128x4xbf16>
    %4 = vector.shape_cast %3 : vector<1x128x4xbf16> to vector<128x4xbf16>
    %5 = arith.extf %4 : vector<128x4xbf16> to vector<128x4xf32>
    %c1 = arith.constant 1 : index
    %c0_3 = arith.constant 0 : index
    %c0_4 = arith.constant 0 : index
    %6 = vector.load %arg2[%c1, %c0_3, %c0_4] : memref<4x128x4xbf16, #tpu.memory_space<vmem>>, vector<1x128x4xbf16>
    %7 = vector.shape_cast %6 : vector<1x128x4xbf16> to vector<128x4xbf16>
    %8 = arith.extf %7 : vector<128x4xbf16> to vector<128x4xf32>
    %c2 = arith.constant 2 : index
    %c0_5 = arith.constant 0 : index
    %c0_6 = arith.constant 0 : index
    %9 = vector.load %arg2[%c2, %c0_5, %c0_6] : memref<4x128x4xbf16, #tpu.memory_space<vmem>>, vector<1x128x4xbf16>
    %10 = vector.shape_cast %9 : vector<1x128x4xbf16> to vector<128x4xbf16>
    %11 = arith.extf %10 : vector<128x4xbf16> to vector<128x4xf32>
    %c3 = arith.constant 3 : index
    %c0_7 = arith.constant 0 : index
    %c0_8 = arith.constant 0 : index
    %12 = vector.load %arg2[%c3, %c0_7, %c0_8] : memref<4x128x4xbf16, #tpu.memory_space<vmem>>, vector<1x128x4xbf16>
    %13 = vector.shape_cast %12 : vector<1x128x4xbf16> to vector<128x4xbf16>
    %14 = arith.extf %13 : vector<128x4xbf16> to vector<128x4xf32>
    %15 = arith.addf %5, %8 : vector<128x4xf32>
    %16 = arith.addf %11, %14 : vector<128x4xf32>
    %17 = arith.addf %15, %16 : vector<128x4xf32>
    %18 = arith.mulf %5, %5 : vector<128x4xf32>
    %19 = arith.mulf %8, %8 : vector<128x4xf32>
    %20 = arith.addf %18, %19 : vector<128x4xf32>
    %21 = arith.mulf %11, %11 : vector<128x4xf32>
    %22 = arith.mulf %14, %14 : vector<128x4xf32>
    %23 = arith.addf %21, %22 : vector<128x4xf32>
    %24 = arith.addf %20, %23 : vector<128x4xf32>
    %c0_9 = arith.constant 0 : index
    %c0_10 = arith.constant 0 : index
    %25 = vector.load %arg4[%c0_9, %c0_10] : memref<2x4xf32, #tpu.memory_space<vmem>>, vector<1x4xf32>
    %cst = arith.constant dense<0.000000e+00> : vector<4xf32>
    %26 = vector.multi_reduction <add>, %17, %cst [0] : vector<128x4xf32> to vector<4xf32>
    %27 = vector.shape_cast %26 : vector<4xf32> to vector<1x4xf32>
    %28 = arith.addf %25, %27 : vector<1x4xf32>
    %c0_11 = arith.constant 0 : index
    %c0_12 = arith.constant 0 : index
    %29 = vector.load %arg4[%c0_11, %c0_12] : memref<2x4xf32, #tpu.memory_space<vmem>>, vector<1x4xf32>
    tpu.vector_store %arg4[%c0_11, %c0_12], %28 {strides = array<i32>} : memref<2x4xf32, #tpu.memory_space<vmem>>, vector<1x4xf32>,
    %c1_13 = arith.constant 1 : index
    %c0_14 = arith.constant 0 : index
    %30 = vector.load %arg4[%c1_13, %c0_14] : memref<2x4xf32, #tpu.memory_space<vmem>>, vector<1x4xf32>
    %cst_15 = arith.constant dense<0.000000e+00> : vector<4xf32>
    %31 = vector.multi_reduction <add>, %24, %cst_15 [0] : vector<128x4xf32> to vector<4xf32>
    %32 = vector.shape_cast %31 : vector<4xf32> to vector<1x4xf32>
    %33 = arith.addf %30, %32 : vector<1x4xf32>
    %c1_16 = arith.constant 1 : index
    %c0_17 = arith.constant 0 : index
    %34 = vector.load %arg4[%c1_16, %c0_17] : memref<2x4xf32, #tpu.memory_space<vmem>>, vector<1x4xf32>
    tpu.vector_store %arg4[%c1_16, %c0_17], %33 {strides = array<i32>} : memref<2x4xf32, #tpu.memory_space<vmem>>, vector<1x4xf32>,
    %c0_i32_18 = arith.constant 0 : i32
    %35 = arith.cmpi eq, %arg1, %c0_i32_18 : i32
    %36 = arith.extui %35 : i1 to i32
    %c0_i32_19 = arith.constant 0 : i32
    %37 = arith.cmpi ne, %36, %c0_i32_19 : i32
    scf.if %37 {
      %c0_20 = arith.constant 0 : index
      %c0_21 = arith.constant 0 : index
      %38 = vector.load %arg4[%c0_20, %c0_21] : memref<2x4xf32, #tpu.memory_space<vmem>>, vector<2x4xf32>
      %c0_22 = arith.constant 0 : index
      %c0_23 = arith.constant 0 : index
      %c0_24 = arith.constant 0 : index
      %39 = vector.load %arg3[%c0_22, %c0_23, %c0_24] : memref<1x2x4xf32, #tpu.memory_space<vmem>>, vector<1x2x4xf32>
      %40 = vector.shape_cast %39 : vector<1x2x4xf32> to vector<2x4xf32>
      %41 = vector.shape_cast %38 : vector<2x4xf32> to vector<1x2x4xf32>
      tpu.vector_store %arg3[%c0_22, %c0_23, %c0_24], %41 {strides = array<i32>} : memref<1x2x4xf32, #tpu.memory_space<vmem>>, vector<1x2x4xf32>,
    } else {
    }
    return
  }
  func.func @transform_0(%arg0: i32, %arg1: i32) -> (i32, i32, i32) {
    %c1_i32 = arith.constant 1 : i32
    %0 = arith.muli %arg0, %c1_i32 : i32
    %1 = arith.addi %0, %arg1 : i32
    %c0_i32 = arith.constant 0 : i32
    %c0_i32_0 = arith.constant 0 : i32
    %c0_i32_1 = arith.constant 0 : i32
    return %c0_i32, %1, %c0_i32_0 : i32, i32, i32
  }
  func.func @transform_1(%arg0: i32, %arg1: i32) -> (i32, i32, i32) {
    %c0_i32 = arith.constant 0 : i32
    %c0_i32_0 = arith.constant 0 : i32
    %c0_i32_1 = arith.constant 0 : i32
    return %arg0, %c0_i32, %c0_i32_0 : i32, i32, i32
  }
}

</mosaic_0001>

<bundles_post_ra>
// kernel: transition_forward.3
= control target key start
LH: loop header
LB: loop body
LE: loop exit
PB: predicated region body
PF: predicated region fallthrough
CT: control target
= control target key end

     0   :  { %s1367_s12 = smov 0   ;;  %s1369_s13 = smov 0   ;;  %s1763_s0 = inlined_call_operand.vmem [shape: bf16[4,256,4], index: 0, kind: input, shape index: {}]   ;;  %s1764_s1 = inlined_call_operand.vmem [shape: bf16[2,4], index: 1, kind: input, shape index: {}]   ;;  %s1765_s2 = inlined_call_operand.vmem [shape: bf16[4,128], index: 2, kind: input, shape index: {}]   ;;  %s1766_s3 = inlined_call_operand.vmem [shape: bf16[256,128], index: 3, kind: output, shape index: {}]  }
   0x1   :  { %s1371_s14 = smov 0  }
   0x2 LB: > { %s1107_s15 = sadd.s32 4294967295, %s1344_s14   ;;  %s1384_s16 = sadd.s32 1, %s1344_s14   ;;  %s1344_s14 = sphi %s1371_s14, %s1769_s14   ;;  %s1340_s13 = sphi %s1369_s13, %s1768_s13   ;;  %s1336_s12 = sphi %s1367_s12, %s1767_s12  }
   0x3   : > { %s17_s17 = ssub.s32 %s1344_s14, %s1384_s16  ;;  %s20_s18 = sadd.s32 1, %s1340_s13 }
   0x4   : > { %p18_p0 = scmp.eq.s32.totalorder %s17_s17, 0  ;;  %p27_p1 = scmp.ne.s32.totalorder %s1340_s13, %s1336_s12 }
   0x5   : > { %p28_p2 = scmp.eq.s32.totalorder %s1344_s14, 0  ;;  %p1110_p4 = scmp.ge.s32.totalorder %s1344_s14, 2 }
   0x6   : > { %s1393_s19 = scalar_select %p18_p0, %s1340_s13, %s20_s18  }
   0x7   : > { %p29_p3 = por %p28_p2, %p27_p1  ;;  %127 = sbr.rel (%p1110_p4) target bundleno = 34 (0x22), region = 24 }
   0xe   : > { %130 = sbr.rel (!%p29_p3) target bundleno = 34 (0x22), region = 28  ;;  %s132_s20 = sand.u32 (%p29_p3), 1, %s1340_s13  }
   0xf   : > { %s1202_s21 = sshll.u32 (%p29_p3), %s1344_s14, 6  ;;  %s1111_s22 = sshll.u32 (%p29_p3), %s132_s20, 8 }
  0x10   : > { %s1401_s25 = scalar_lea.vmem (%p29_p3), %s1763_s0, %s1202_s21  ;;  %s1406_s26 = scalar_lea.vmem (%p29_p3), [#allocation2], %s1111_s22 }
  0x11   : > { %v153_v0 = vld [vmem:[%s1401_s25] sm:$0xff] (%p29_p3)   ;;  %v157_v1 = vld [vmem:[%s1401_s25 + $0x8] sm:$0xff] (%p29_p3)   ;;  %v161_v2 = vld [vmem:[%s1401_s25 + $0x10] sm:$0xff] (%p29_p3)  }
  0x12   : > { %154 = vst [vmem:[%s1406_s26] sm:$0xff] (%p29_p3), %v153_v0   ;;  %158 = vst [vmem:[%s1406_s26 + $0x8] sm:$0xff] (%p29_p3), %v157_v1   ;;  %v165_v3 = vld [vmem:[%s1401_s25 + $0x18] sm:$0xff] (%p29_p3)   ;;  %v169_v4 = vld [vmem:[%s1401_s25 + $0x20] sm:$0xff] (%p29_p3)  }
  0x13   : > { %162 = vst [vmem:[%s1406_s26 + $0x10] sm:$0xff] (%p29_p3), %v161_v2   ;;  %v173_v5 = vld [vmem:[%s1401_s25 + $0x28] sm:$0xff] (%p29_p3)   ;;  %166 = vst [vmem:[%s1406_s26 + $0x18] sm:$0xff] (%p29_p3), %v165_v3   ;;  %v177_v6 = vld [vmem:[%s1401_s25 + $0x30] sm:$0xff] (%p29_p3)  }
  0x14   : > { %170 = vst [vmem:[%s1406_s26 + $0x20] sm:$0xff] (%p29_p3), %v169_v4   ;;  %174 = vst [vmem:[%s1406_s26 + $0x28] sm:$0xff] (%p29_p3), %v173_v5   ;;  %v181_v7 = vld [vmem:[%s1401_s25 + $0x38] sm:$0xff] (%p29_p3)   ;;  %v185_v8 = vld [vmem:[%s1401_s25 + $0x80] sm:$0xff] (%p29_p3)  }
  0x15   : > { %178 = vst [vmem:[%s1406_s26 + $0x30] sm:$0xff] %v177_v6   ;;  %182 = vst [vmem:[%s1406_s26 + $0x38] sm:$0xff] %v181_v7   ;;  %v189_v9 = vld [vmem:[%s1401_s25 + $0x88] sm:$0xff]   ;;  %v193_v10 = vld [vmem:[%s1401_s25 + $0x90] sm:$0xff]  }
  0x16   : > { %186 = vst [vmem:[%s1406_s26 + $0x40] sm:$0xff] %v185_v8   ;;  %v197_v11 = vld [vmem:[%s1401_s25 + $0x98] sm:$0xff]   ;;  %190 = vst [vmem:[%s1406_s26 + $0x48] sm:$0xff] %v189_v9   ;;  %v201_v12 = vld [vmem:[%s1401_s25 + $0xa0] sm:$0xff]  }
  0x17   : > { %194 = vst [vmem:[%s1406_s26 + $0x50] sm:$0xff] %v193_v10   ;;  %198 = vst [vmem:[%s1406_s26 + $0x58] sm:$0xff] %v197_v11   ;;  %v205_v13 = vld [vmem:[%s1401_s25 + $0xa8] sm:$0xff]   ;;  %v209_v14 = vld [vmem:[%s1401_s25 + $0xb0] sm:$0xff]  }
  0x18   : > { %202 = vst [vmem:[%s1406_s26 + $0x60] sm:$0xff] %v201_v12   ;;  %206 = vst [vmem:[%s1406_s26 + $0x68] sm:$0xff] %v205_v13   ;;  %v213_v15 = vld [vmem:[%s1401_s25 + $0xb8] sm:$0xff]   ;;  %v217_v16 = vld [vmem:[%s1401_s25 + $0x100] sm:$0xff]  }
  0x19   : > { %210 = vst [vmem:[%s1406_s26 + $0x70] sm:$0xff] %v209_v14   ;;  %v221_v17 = vld [vmem:[%s1401_s25 + $0x108] sm:$0xff]   ;;  %214 = vst [vmem:[%s1406_s26 + $0x78] sm:$0xff] %v213_v15   ;;  %v225_v18 = vld [vmem:[%s1401_s25 + $0x110] sm:$0xff]  }
  0x1a   : > { %218 = vst [vmem:[%s1406_s26 + $0x80] sm:$0xff] %v217_v16   ;;  %222 = vst [vmem:[%s1406_s26 + $0x88] sm:$0xff] %v221_v17   ;;  %v229_v19 = vld [vmem:[%s1401_s25 + $0x118] sm:$0xff]   ;;  %v233_v20 = vld [vmem:[%s1401_s25 + $0x120] sm:$0xff]  }
  0x1b   : > { %226 = vst [vmem:[%s1406_s26 + $0x90] sm:$0xff] %v225_v18   ;;  %230 = vst [vmem:[%s1406_s26 + $0x98] sm:$0xff] %v229_v19   ;;  %v237_v21 = vld [vmem:[%s1401_s25 + $0x128] sm:$0xff]   ;;  %v241_v22 = vld [vmem:[%s1401_s25 + $0x130] sm:$0xff]  }
  0x1c   : > { %234 = vst [vmem:[%s1406_s26 + $0xa0] sm:$0xff] %v233_v20   ;;  %v245_v23 = vld [vmem:[%s1401_s25 + $0x138] sm:$0xff]   ;;  %238 = vst [vmem:[%s1406_s26 + $0xa8] sm:$0xff] %v237_v21   ;;  %v249_v24 = vld [vmem:[%s1401_s25 + $0x180] sm:$0xff]  }
  0x1d   : > { %242 = vst [vmem:[%s1406_s26 + $0xb0] sm:$0xff] %v241_v22   ;;  %246 = vst [vmem:[%s1406_s26 + $0xb8] sm:$0xff] %v245_v23   ;;  %v253_v25 = vld [vmem:[%s1401_s25 + $0x188] sm:$0xff]   ;;  %v257_v26 = vld [vmem:[%s1401_s25 + $0x190] sm:$0xff]  }
  0x1e   : > { %250 = vst [vmem:[%s1406_s26 + $0xc0] sm:$0xff] %v249_v24   ;;  %254 = vst [vmem:[%s1406_s26 + $0xc8] sm:$0xff] %v253_v25   ;;  %v261_v27 = vld [vmem:[%s1401_s25 + $0x198] sm:$0xff]   ;;  %v265_v28 = vld [vmem:[%s1401_s25 + $0x1a0] sm:$0xff]  }
  0x1f   : > { %258 = vst [vmem:[%s1406_s26 + $0xd0] sm:$0xff] %v257_v26   ;;  %v269_v29 = vld [vmem:[%s1401_s25 + $0x1a8] sm:$0xff]   ;;  %262 = vst [vmem:[%s1406_s26 + $0xd8] sm:$0xff] %v261_v27   ;;  %v273_v30 = vld [vmem:[%s1401_s25 + $0x1b0] sm:$0xff]  }
  0x20   : > { %266 = vst [vmem:[%s1406_s26 + $0xe0] sm:$0xff] %v265_v28   ;;  %270 = vst [vmem:[%s1406_s26 + $0xe8] sm:$0xff] %v269_v29   ;;  %v277_v31 = vld [vmem:[%s1401_s25 + $0x1b8] sm:$0xff]  }
  0x21   : > { %274 = vst [vmem:[%s1406_s26 + $0xf0] sm:$0xff] %v273_v30   ;;  %278 = vst [vmem:[%s1406_s26 + $0xf8] sm:$0xff] %v277_v31  }
  0x22 PF: > { %p1114_p5 = scmp.ge.s32.totalorder %s1344_s14, 1  ;;  %p430_p6 = scmp.lt.s32.totalorder %s1344_s14, 3 }
  0x24   : > { %p431_p7 = pnand %p1114_p5, %p430_p6 }
  0x25   : > { %v798_v32 = vld [vmem:[%s1765_s2] sm:$0x3] (!%p431_p7)  ;;  %vm864_vm0 = vcmask (!%p431_p7), 1041408   ;;  %s437_s29 = sand.u32 (!%p431_p7), 1, %s1336_s12   ;;  %v488_v34 = vlaneseq (!%p431_p7)  ;;  %vm839_vm1 = vcmask (!%p431_p7), 31744   ;;  %v1346_v8 = vmov (!%p431_p7), 0  }
  0x26   : > { %434 = sbr.rel (%p431_p7) target bundleno = 333 (0x14d), region = 69  ;;  %v468_v33 = vld [vmem:[%s1764_s1] sm:$0x1] (!%p431_p7)  ;;  %1295 = vmatprep.subr.msk.bf16.mxu0 (!%p431_p7), %vm864_vm0, %v798_v32  ;;  %1296 = vmatprep.subr.msk.bf16.mxu1 (!%p431_p7), %vm864_vm0, %v798_v32  ;;  %v866_v35 = vsel (!%p431_p7), %vm864_vm0, %v798_v32, 0  ;;  %s1115_s5 = sshll.u32 (!%p431_p7), %s437_s29, 8 }
  0x27   : > { %v512_v36 = vshrl.u32 (!%p431_p7), %v468_v33, 16  ;;  %1276 = vmatpush3.bf16.msra.mxu0 (!%p431_p7), %v866_v35  ;;  %1294 = vmatpush3.bf16.msra.mxu1 (!%p431_p7), %v866_v35  ;;  %v486_v37 = vpack.i.b16 (!%p431_p7), %v468_v33, %v468_v33  ;;  %v489_v38 = vshrl.u32 (!%p431_p7), %v488_v34, 7  ;;  %s1478_s6 = scalar_lea.vmem (!%p431_p7), [#allocation2], %s1115_s5  ;;  %s1116_s7 = sshll.u32 (!%p431_p7), %s1107_s15, 4 }
  0x28   : > { %v469_v41 = vld [vmem:[%s1478_s6] sm:$0xf] (!%p431_p7)  ;;  %v470_v42 = vld [vmem:[%s1478_s6 + $0x4] sm:$0xf] (!%p431_p7)  ;;  %p462_p8 = scmp.lt.s32.totalorder (!%p431_p7), %s1116_s7, 31 }
  0x29   : > { %v513_v39 = vpack.i.b16 (!%p431_p7), %v512_v36, %v512_v36  ;;  %v490_v40 = vsub.s32 (!%p431_p7), 0, %v489_v38  ;;  %v1120_v45 = vld [vmem:[%s1478_s6 + $0x40] sm:$0xf] (!%p431_p7)  ;;  %v1121_v46 = vld [vmem:[%s1478_s6 + $0x44] sm:$0xf] (!%p431_p7) }
  0x2a   : > { %v1136_v47 = vld [vmem:[%s1478_s6 + $0x80] sm:$0xf] (!%p431_p7)  ;;  %v1137_v50 = vld [vmem:[%s1478_s6 + $0x84] sm:$0xf] (!%p431_p7)  ;;  %v471_v38 = vld [vmem:[%s1478_s6 + $0x8] sm:$0xf] (!%p431_p7) }
  0x2b   : > { %v491_v43 = vrot.slane (!%p431_p7), %v486_v37, %v490_v40  ;;  %v518_v44 = vrot.slane (!%p431_p7), %v513_v39, %v490_v40  ;;  %v1152_v51 = vld [vmem:[%s1478_s6 + $0xc0] sm:$0xf] (!%p431_p7)  ;;  %v1153_v52 = vld [vmem:[%s1478_s6 + $0xc4] sm:$0xf] (!%p431_p7) }
  0x2c   : > { %v477_v5 = vld [vmem:[%s1478_s6 + $0x20] sm:$0xf] (!%p431_p7)  ;;  %v478_v6 = vld [vmem:[%s1478_s6 + $0x24] sm:$0xf] (!%p431_p7) }
  0x2d   : > { %v1485_v48 = vcombine.low %v491_v43, %v491_v43  ;;  %v1487_v49 = vcombine.low %v518_v44, %v518_v44  ;;  %v1128_v7 = vld [vmem:[%s1478_s6 + $0x60] sm:$0xf]  ;;  %v1129_v13 = vld [vmem:[%s1478_s6 + $0x64] sm:$0xf]  ;;  %v472_v43 = vld [vmem:[%s1478_s6 + $0xc] sm:$0xf] }
  0x2e   : > { %v1144_v14 = vld [vmem:[%s1478_s6 + $0xa0] sm:$0xf]  ;;  %v1145_v15 = vld [vmem:[%s1478_s6 + $0xa4] sm:$0xf]  ;;  %v1122_v44 = vld [vmem:[%s1478_s6 + $0x48] sm:$0xf] }
  0x2f   : > { %v496_v53 = vmul.bf16 %v1485_v48, %v469_v41  ;;  %v497_v54 = vmul.bf16 %v1485_v48, %v470_v42  ;;  %v572_v55 = vmul.bf16 %v1120_v45, %v1485_v48  ;;  %v573_v56 = vmul.bf16 %v1121_v46, %v1485_v48  ;;  %v1160_v36 = vld [vmem:[%s1478_s6 + $0xe0] sm:$0xf]  ;;  %v1161_v37 = vld [vmem:[%s1478_s6 + $0xe4] sm:$0xf]  ;;  %s1771_s7 = smov (!%p462_p8, %s1116_s7), 31 }
  0x30   : > { %v653_v57 = vmul.bf16 %v1136_v47, %v1485_v48  ;;  %v654_v58 = vmul.bf16 %v1137_v50, %v1485_v48  ;;  %v734_v59 = vmul.bf16 %v1152_v51, %v1485_v48  ;;  %v735_v60 = vmul.bf16 %v1153_v52, %v1485_v48  ;;  %v1123_v51 = vld [vmem:[%s1478_s6 + $0x4c] sm:$0xf]  ;;  %s1117_s8 = sshll.u32 %s1771_s7, 2 }
  0x31   : > { %v523_v61 = vadd.bf16 %v1487_v49, %v496_v53  ;;  %v524_v62 = vadd.bf16 %v1487_v49, %v497_v54  ;;  %v588_v63 = vadd.bf16 %v1487_v49, %v572_v55  ;;  %v589_v0 = vadd.bf16 %v1487_v49, %v573_v56  ;;  %s465_s11 = scalar_lea.vmem %s1766_s3, %s1117_s8 }
  0x32   : > { %v669_v1 = vadd.bf16 %v1487_v49, %v653_v57  ;;  %v670_v2 = vadd.bf16 %v1487_v49, %v654_v58  ;;  %v750_v3 = vadd.bf16 %v1487_v49, %v734_v59  ;;  %v751_v4 = vadd.bf16 %v1487_v49, %v735_v60 }
  0x33   : > { %v539_v9 = vmax.bf16 %v1346_v8, %v523_v61  ;;  %v540_v10 = vmax.bf16 %v1346_v8, %v524_v62  ;;  %v604_v11 = vmax.bf16 %v1346_v8, %v588_v63  ;;  %v605_v12 = vmax.bf16 %v1346_v8, %v589_v0  ;;  %v1138_v0 = vld [vmem:[%s1478_s6 + $0x88] sm:$0xf] }
  0x34   : > { %v685_v16 = vmax.bf16 %v1346_v8, %v669_v1  ;;  %v686_v17 = vmax.bf16 %v1346_v8, %v670_v2  ;;  %v766_v18 = vmax.bf16 %v1346_v8, %v750_v3  ;;  %v767_v19 = vmax.bf16 %v1346_v8, %v751_v4  ;;  %v1139_v1 = vld [vmem:[%s1478_s6 + $0x8c] sm:$0xf] }
  0x35   : > { %v620_v20 = vadd.bf16 %v604_v11, %v539_v9  ;;  %v621_v21 = vadd.bf16 %v605_v12, %v540_v10  ;;  %v504_v22 = vmul.bf16 %v1485_v48, %v477_v5  ;;  %v505_v23 = vmul.bf16 %v1485_v48, %v478_v6  ;;  %v1154_v6 = vld [vmem:[%s1478_s6 + $0xc8] sm:$0xf]  ;;  %v1155_v12 = vld [vmem:[%s1478_s6 + $0xcc] sm:$0xf] }
  0x36   : > { %v580_v24 = vmul.bf16 %v1128_v7, %v1485_v48  ;;  %v581_v25 = vmul.bf16 %v1129_v13, %v1485_v48  ;;  %v661_v26 = vmul.bf16 %v1144_v14, %v1485_v48  ;;  %v662_v27 = vmul.bf16 %v1145_v15, %v1485_v48 }
  0x37   : > { %v701_v28 = vadd.bf16 %v685_v16, %v620_v20  ;;  %v702_v29 = vadd.bf16 %v686_v17, %v621_v21  ;;  %v531_v30 = vadd.bf16 %v1487_v49, %v504_v22  ;;  %v532_v31 = vadd.bf16 %v1487_v49, %v505_v23  ;;  %v479_v17 = vld [vmem:[%s1478_s6 + $0x28] sm:$0xf]  ;;  %v480_v22 = vld [vmem:[%s1478_s6 + $0x2c] sm:$0xf] }
  0x38   : > { %v596_v32 = vadd.bf16 %v1487_v49, %v580_v24  ;;  %v597_v33 = vadd.bf16 %v1487_v49, %v581_v25  ;;  %v677_v34 = vadd.bf16 %v1487_v49, %v661_v26  ;;  %v678_v35 = vadd.bf16 %v1487_v49, %v662_v27  ;;  %v1130_v27 = vld [vmem:[%s1478_s6 + $0x68] sm:$0xf] }
  0x39   : > { %v782_v39 = vadd.bf16 %v766_v18, %v701_v28  ;;  %v783_v40 = vadd.bf16 %v767_v19, %v702_v29  ;;  %v547_v41 = vmax.bf16 %v1346_v8, %v531_v30  ;;  %v548_v42 = vmax.bf16 %v1346_v8, %v532_v31  ;;  %v1131_v28 = vld [vmem:[%s1478_s6 + $0x6c] sm:$0xf] }
  0x3a   : > { %v612_v45 = vmax.bf16 %v1346_v8, %v596_v32  ;;  %v613_v46 = vmax.bf16 %v1346_v8, %v597_v33  ;;  %v693_v47 = vmax.bf16 %v1346_v8, %v677_v34  ;;  %v694_v50 = vmax.bf16 %v1346_v8, %v678_v35 }
  0x3b   : > { %v1168_v52 = vcombine.low %v782_v39, %v783_v40  ;;  %v742_v53 = vmul.bf16 %v1160_v36, %v1485_v48  ;;  %v743_v54 = vmul.bf16 %v1161_v37, %v1485_v48  ;;  %v498_v55 = vmul.bf16 %v1485_v48, %v471_v38  ;;  %v1146_v37 = vld [vmem:[%s1478_s6 + $0xa8] sm:$0xf] }
  0x3c   : > { %v628_v56 = vadd.bf16 %v612_v45, %v547_v41  ;;  %v629_v57 = vadd.bf16 %v613_v46, %v548_v42  ;;  %v499_v58 = vmul.bf16 %v1485_v48, %v472_v43  ;;  %v574_v59 = vmul.bf16 %v1122_v44, %v1485_v48  ;;  %v1147_v42 = vld [vmem:[%s1478_s6 + $0xac] sm:$0xf] }
  0x3d   : > { %1277 = vmatprep.mubr.msk.bf16.mxu0 %vm839_vm1, %v1168_v52  ;;  %v758_v60 = vadd.bf16 %v1487_v49, %v742_v53  ;;  %v759_v61 = vadd.bf16 %v1487_v49, %v743_v54  ;;  %v525_v62 = vadd.bf16 %v1487_v49, %v498_v55  ;;  %v575_v63 = vmul.bf16 %v1123_v51, %v1485_v48  ;;  %v1163_v54 = vld [vmem:[%s1478_s6 + $0xec] sm:$0xf]  ;;  %v473_v55 = vld [vmem:[%s1478_s6 + $0x10] sm:$0xf] }
  0x3e   : > { %v709_v2 = vadd.bf16 %v693_v47, %v628_v56  ;;  %v710_v3 = vadd.bf16 %v694_v50, %v629_v57  ;;  %v526_v4 = vadd.bf16 %v1487_v49, %v499_v58  ;;  %v590_v5 = vadd.bf16 %v1487_v49, %v574_v59  ;;  %v1162_v47 = vld [vmem:[%s1478_s6 + $0xe8] sm:$0xf] }
  0x3f   : > { %v774_v7 = vmax.bf16 %v1346_v8, %v758_v60  ;;  %v775_v9 = vmax.bf16 %v1346_v8, %v759_v61  ;;  %v541_v10 = vmax.bf16 %v1346_v8, %v525_v62  ;;  %v591_v11 = vadd.bf16 %v1487_v49, %v575_v63 }
  0x40   : > { %v542_v13 = vmax.bf16 %v1346_v8, %v526_v4  ;;  %v606_v14 = vmax.bf16 %v1346_v8, %v590_v5  ;;  %v655_v15 = vmul.bf16 %v1138_v0, %v1485_v48  ;;  %v656_v16 = vmul.bf16 %v1139_v1, %v1485_v48  ;;  %v474_v0 = vld [vmem:[%s1478_s6 + $0x14] sm:$0xf]  ;;  %v1124_v5 = vld [vmem:[%s1478_s6 + $0x50] sm:$0xf] }
  0x41   : > { %v790_v18 = vadd.bf16 %v774_v7, %v709_v2  ;;  %v791_v19 = vadd.bf16 %v775_v9, %v710_v3  ;;  %v607_v20 = vmax.bf16 %v1346_v8, %v591_v11  ;;  %v736_v21 = vmul.bf16 %v1154_v6, %v1485_v48  ;;  %v1125_v6 = vld [vmem:[%s1478_s6 + $0x54] sm:$0xf] }
  0x42   : > { %v622_v23 = vadd.bf16 %v606_v14, %v541_v10  ;;  %v671_v24 = vadd.bf16 %v1487_v49, %v655_v15  ;;  %v672_v25 = vadd.bf16 %v1487_v49, %v656_v16  ;;  %v737_v26 = vmul.bf16 %v1155_v12, %v1485_v48  ;;  %v1140_v16 = vld [vmem:[%s1478_s6 + $0x90] sm:$0xf] }
  0x43   : > { %v1172_v29 = vcombine.low %v790_v18, %v791_v19  ;;  %v623_v30 = vadd.bf16 %v607_v20, %v542_v13  ;;  %v752_v31 = vadd.bf16 %v1487_v49, %v736_v21  ;;  %v506_v32 = vmul.bf16 %v1485_v48, %v479_v17  ;;  %v1141_v21 = vld [vmem:[%s1478_s6 + $0x94] sm:$0xf] }
  0x44   : > { %v687_v33 = vmax.bf16 %v1346_v8, %v671_v24  ;;  %v688_v34 = vmax.bf16 %v1346_v8, %v672_v25  ;;  %v753_v35 = vadd.bf16 %v1487_v49, %v737_v26  ;;  %v507_v36 = vmul.bf16 %v1485_v48, %v480_v22  ;;  %v1156_v22 = vld [vmem:[%s1478_s6 + $0xd0] sm:$0xf] }
  0x45   : > { %1285 = vmatprep.mubr.msk.bf16.mxu1 %vm839_vm1, %v1172_v29  ;;  %v768_v38 = vmax.bf16 %v1346_v8, %v752_v31  ;;  %v533_v39 = vadd.bf16 %v1487_v49, %v506_v32  ;;  %v582_v40 = vmul.bf16 %v1130_v27, %v1485_v48  ;;  %v583_v41 = vmul.bf16 %v1131_v28, %v1485_v48  ;;  %v1157_v27 = vld [vmem:[%s1478_s6 + $0xd4] sm:$0xf]  ;;  %v481_v32 = vld [vmem:[%s1478_s6 + $0x30] sm:$0xf] }
  0x46   : > { %v703_v43 = vadd.bf16 %v687_v33, %v622_v23  ;;  %v704_v44 = vadd.bf16 %v688_v34, %v623_v30  ;;  %v769_v45 = vmax.bf16 %v1346_v8, %v753_v35  ;;  %v534_v46 = vadd.bf16 %v1487_v49, %v507_v36 }
  0x47   : > { %v549_v50 = vmax.bf16 %v1346_v8, %v533_v39  ;;  %v598_v51 = vadd.bf16 %v1487_v49, %v582_v40  ;;  %v599_v52 = vadd.bf16 %v1487_v49, %v583_v41  ;;  %v663_v53 = vmul.bf16 %v1146_v37, %v1485_v48  ;;  %v482_v41 = vld [vmem:[%s1478_s6 + $0x34] sm:$0xf] }
  0x48   : > { %v784_v56 = vadd.bf16 %v768_v38, %v703_v43  ;;  %v785_v57 = vadd.bf16 %v769_v45, %v704_v44  ;;  %v550_v58 = vmax.bf16 %v1346_v8, %v534_v46  ;;  %v664_v59 = vmul.bf16 %v1147_v42, %v1485_v48  ;;  %v1132_v46 = vld [vmem:[%s1478_s6 + $0x70] sm:$0xf] }
  0x49   : > { %v614_v60 = vmax.bf16 %v1346_v8, %v598_v51  ;;  %v615_v61 = vmax.bf16 %v1346_v8, %v599_v52  ;;  %v679_v62 = vadd.bf16 %v1487_v49, %v663_v53  ;;  %v744_v63 = vmul.bf16 %v1162_v47, %v1485_v48  ;;  %v1133_v47 = vld [vmem:[%s1478_s6 + $0x74] sm:$0xf] }
  0x4a   : > { %v1169_v1 = vcombine.low %v784_v56, %v785_v57  ;;  %v680_v2 = vadd.bf16 %v1487_v49, %v664_v59  ;;  %v745_v3 = vmul.bf16 %v1163_v54, %v1485_v48  ;;  %v500_v4 = vmul.bf16 %v1485_v48, %v473_v55  ;;  %v1148_v54 = vld [vmem:[%s1478_s6 + $0xb0] sm:$0xf]  ;;  %v1149_v59 = vld [vmem:[%s1478_s6 + $0xb4] sm:$0xf] }
  0x4b   : > { %v630_v7 = vadd.bf16 %v614_v60, %v549_v50  ;;  %v631_v9 = vadd.bf16 %v615_v61, %v550_v58  ;;  %v695_v10 = vmax.bf16 %v1346_v8, %v679_v62  ;;  %v760_v11 = vadd.bf16 %v1487_v49, %v744_v63 }
  0x4c   : > { %1278 = vmatmul.mubr.msk.bf16.vlgmr.msra.gmra.mrb[0].mxu0 %vm839_vm1, %v1169_v1  ;;  %v696_v12 = vmax.bf16 %v1346_v8, %v680_v2  ;;  %v761_v13 = vadd.bf16 %v1487_v49, %v745_v3  ;;  %v501_v14 = vmul.bf16 %v1485_v48, %v474_v0  ;;  %v527_v15 = vadd.bf16 %v1487_v49, %v500_v4  ;;  %v1164_v0 = vld [vmem:[%s1478_s6 + $0xf0] sm:$0xf] }
  0x4d   : > { %v711_v17 = vadd.bf16 %v695_v10, %v630_v7  ;;  %v776_v18 = vmax.bf16 %v1346_v8, %v760_v11  ;;  %v576_v19 = vmul.bf16 %v1124_v5, %v1485_v48  ;;  %v577_v20 = vmul.bf16 %v1125_v6, %v1485_v48  ;;  %v1165_v5 = vld [vmem:[%s1478_s6 + $0xf4] sm:$0xf]  ;;  %v475_v11 = vld [vmem:[%s1478_s6 + $0x18] sm:$0xf] }
  0x4e   : > { %v712_v23 = vadd.bf16 %v696_v12, %v631_v9  ;;  %v777_v24 = vmax.bf16 %v1346_v8, %v761_v13  ;;  %v528_v25 = vadd.bf16 %v1487_v49, %v501_v14  ;;  %v543_v26 = vmax.bf16 %v1346_v8, %v527_v15 }
  0x4f   : > { %v792_v28 = vadd.bf16 %v776_v18, %v711_v17  ;;  %v592_v29 = vadd.bf16 %v1487_v49, %v576_v19  ;;  %v593_v30 = vadd.bf16 %v1487_v49, %v577_v20  ;;  %v657_v31 = vmul.bf16 %v1140_v16, %v1485_v48  ;;  %v476_v20 = vld [vmem:[%s1478_s6 + $0x1c] sm:$0xf] }
  0x50   : > { %v793_v33 = vadd.bf16 %v777_v24, %v712_v23  ;;  %v544_v34 = vmax.bf16 %v1346_v8, %v528_v25  ;;  %v658_v35 = vmul.bf16 %v1141_v21, %v1485_v48  ;;  %v738_v36 = vmul.bf16 %v1156_v22, %v1485_v48  ;;  %v1126_v21 = vld [vmem:[%s1478_s6 + $0x58] sm:$0xf] }
  0x51   : > { %v608_v37 = vmax.bf16 %v1346_v8, %v592_v29  ;;  %v609_v38 = vmax.bf16 %v1346_v8, %v593_v30  ;;  %v673_v39 = vadd.bf16 %v1487_v49, %v657_v31  ;;  %v739_v40 = vmul.bf16 %v1157_v27, %v1485_v48  ;;  %v1142_v31 = vld [vmem:[%s1478_s6 + $0x98] sm:$0xf] }
  0x52   : > { %v1173_v42 = vcombine.low %v792_v28, %v793_v33  ;;  %v674_v43 = vadd.bf16 %v1487_v49, %v658_v35  ;;  %v754_v44 = vadd.bf16 %v1487_v49, %v738_v36  ;;  %v508_v45 = vmul.bf16 %v1485_v48, %v481_v32  ;;  %v1143_v36 = vld [vmem:[%s1478_s6 + $0x9c] sm:$0xf] }
  0x53   : > { %v624_v50 = vadd.bf16 %v608_v37, %v543_v26  ;;  %v625_v51 = vadd.bf16 %v609_v38, %v544_v34  ;;  %v689_v52 = vmax.bf16 %v1346_v8, %v673_v39  ;;  %v755_v53 = vadd.bf16 %v1487_v49, %v739_v40  ;;  %v1127_v26 = vld [vmem:[%s1478_s6 + $0x5c] sm:$0xf] }
  0x54   : > { %1286 = vmatmul.mubr.msk.bf16.vlgmr.msra.gmra.mrb[0].mxu1 %vm839_vm1, %v1173_v42  ;;  %v690_v55 = vmax.bf16 %v1346_v8, %v674_v43  ;;  %v770_v56 = vmax.bf16 %v1346_v8, %v754_v44  ;;  %v509_v57 = vmul.bf16 %v1485_v48, %v482_v41  ;;  %v535_v58 = vadd.bf16 %v1487_v49, %v508_v45  ;;  %v1158_v41 = vld [vmem:[%s1478_s6 + $0xd8] sm:$0xf] }
  0x55   : > { %v705_v60 = vadd.bf16 %v689_v52, %v624_v50  ;;  %v771_v61 = vmax.bf16 %v1346_v8, %v755_v53  ;;  %v584_v62 = vmul.bf16 %v1132_v46, %v1485_v48  ;;  %v585_v63 = vmul.bf16 %v1133_v47, %v1485_v48  ;;  %v1159_v46 = vld [vmem:[%s1478_s6 + $0xdc] sm:$0xf]  ;;  %v483_v53 = vld [vmem:[%s1478_s6 + $0x38] sm:$0xf] }
  0x56   : > { %v706_v1 = vadd.bf16 %v690_v55, %v625_v51  ;;  %v536_v2 = vadd.bf16 %v1487_v49, %v509_v57  ;;  %v551_v3 = vmax.bf16 %v1346_v8, %v535_v58  ;;  %v665_v4 = vmul.bf16 %v1148_v54, %v1485_v48  ;;  %v484_v58 = vld [vmem:[%s1478_s6 + $0x3c] sm:$0xf] }
  0x57   : > { %v786_v6 = vadd.bf16 %v770_v56, %v705_v60  ;;  %v600_v7 = vadd.bf16 %v1487_v49, %v584_v62  ;;  %v601_v9 = vadd.bf16 %v1487_v49, %v585_v63  ;;  %v666_v10 = vmul.bf16 %v1149_v59, %v1485_v48  ;;  %v1134_v63 = vld [vmem:[%s1478_s6 + $0x78] sm:$0xf] }
  0x58   : > { %v787_v12 = vadd.bf16 %v771_v61, %v706_v1  ;;  %v552_v13 = vmax.bf16 %v1346_v8, %v536_v2  ;;  %v681_v14 = vadd.bf16 %v1487_v49, %v665_v4  ;;  %v746_v15 = vmul.bf16 %v1164_v0, %v1485_v48  ;;  %v1135_v4 = vld [vmem:[%s1478_s6 + $0x7c] sm:$0xf] }
  0x59   : > { %v616_v16 = vmax.bf16 %v1346_v8, %v600_v7  ;;  %v617_v17 = vmax.bf16 %v1346_v8, %v601_v9  ;;  %v682_v18 = vadd.bf16 %v1487_v49, %v666_v10  ;;  %v747_v19 = vmul.bf16 %v1165_v5, %v1485_v48  ;;  %v1150_v10 = vld [vmem:[%s1478_s6 + $0xb8] sm:$0xf] }
  0x5a   : > { %v1170_v22 = vcombine.low %v786_v6, %v787_v12  ;;  %v697_v23 = vmax.bf16 %v1346_v8, %v681_v14  ;;  %v762_v24 = vadd.bf16 %v1487_v49, %v746_v15  ;;  %v502_v25 = vmul.bf16 %v1485_v48, %v475_v11  ;;  %v1151_v15 = vld [vmem:[%s1478_s6 + $0xbc] sm:$0xf] }
  0x5b   : > { %v632_v27 = vadd.bf16 %v616_v16, %v551_v3  ;;  %v633_v28 = vadd.bf16 %v617_v17, %v552_v13  ;;  %v698_v29 = vmax.bf16 %v1346_v8, %v682_v18  ;;  %v763_v30 = vadd.bf16 %v1487_v49, %v747_v19 }
  0x5c   : > { %1281 = vmatprep.mubr.msk.bf16.mxu0 %vm839_vm1, %v1170_v22  ;;  %v778_v32 = vmax.bf16 %v1346_v8, %v762_v24  ;;  %v503_v33 = vmul.bf16 %v1485_v48, %v476_v20  ;;  %v529_v34 = vadd.bf16 %v1487_v49, %v502_v25  ;;  %v578_v35 = vmul.bf16 %v1126_v21, %v1485_v48  ;;  %v1166_v20 = vld [vmem:[%s1478_s6 + $0xf8] sm:$0xf]  ;;  %v1167_v21 = vld [vmem:[%s1478_s6 + $0xfc] sm:$0xf] }
  0x5d   : > { %v713_v37 = vadd.bf16 %v697_v23, %v632_v27  ;;  %v714_v38 = vadd.bf16 %v698_v29, %v633_v28  ;;  %v779_v39 = vmax.bf16 %v1346_v8, %v763_v30  ;;  %v579_v40 = vmul.bf16 %v1127_v26, %v1485_v48 }
  0x5e   : > { %v530_v42 = vadd.bf16 %v1487_v49, %v503_v33  ;;  %v545_v43 = vmax.bf16 %v1346_v8, %v529_v34  ;;  %v594_v44 = vadd.bf16 %v1487_v49, %v578_v35  ;;  %v659_v45 = vmul.bf16 %v1142_v31, %v1485_v48 }
  0x5f   : > { %v794_v47 = vadd.bf16 %v778_v32, %v713_v37  ;;  %v795_v50 = vadd.bf16 %v779_v39, %v714_v38  ;;  %v595_v51 = vadd.bf16 %v1487_v49, %v579_v40  ;;  %v660_v52 = vmul.bf16 %v1143_v36, %v1485_v48 }
  0x60   : > { %v546_v54 = vmax.bf16 %v1346_v8, %v530_v42  ;;  %v610_v55 = vmax.bf16 %v1346_v8, %v594_v44  ;;  %v675_v56 = vadd.bf16 %v1487_v49, %v659_v45  ;;  %v740_v57 = vmul.bf16 %v1158_v41, %v1485_v48 }
  0x61   : > { %v1174_v59 = vcombine.low %v794_v47, %v795_v50  ;;  %v611_v60 = vmax.bf16 %v1346_v8, %v595_v51  ;;  %v676_v61 = vadd.bf16 %v1487_v49, %v660_v52  ;;  %v741_v62 = vmul.bf16 %v1159_v46, %v1485_v48 }
  0x62   : > { %v626_v0 = vadd.bf16 %v610_v55, %v545_v43  ;;  %v691_v1 = vmax.bf16 %v1346_v8, %v675_v56  ;;  %v756_v2 = vadd.bf16 %v1487_v49, %v740_v57  ;;  %v510_v3 = vmul.bf16 %v1485_v48, %v483_v53 }
  0x63   : > { %1289 = vmatprep.mubr.msk.bf16.mxu1 %vm839_vm1, %v1174_v59  ;;  %v627_v5 = vadd.bf16 %v611_v60, %v546_v54  ;;  %v692_v6 = vmax.bf16 %v1346_v8, %v676_v61  ;;  %v757_v7 = vadd.bf16 %v1487_v49, %v741_v62  ;;  %v511_v9 = vmul.bf16 %v1485_v48, %v484_v58 }
  0x64   : > { %v707_v11 = vadd.bf16 %v691_v1, %v626_v0  ;;  %v772_v12 = vmax.bf16 %v1346_v8, %v756_v2  ;;  %v537_v13 = vadd.bf16 %v1487_v49, %v510_v3  ;;  %v586_v14 = vmul.bf16 %v1134_v63, %v1485_v48 }
  0x65   : > { %v708_v16 = vadd.bf16 %v692_v6, %v627_v5  ;;  %v773_v17 = vmax.bf16 %v1346_v8, %v757_v7  ;;  %v538_v18 = vadd.bf16 %v1487_v49, %v511_v9  ;;  %v587_v19 = vmul.bf16 %v1135_v4, %v1485_v48 }
  0x66   : > { %v788_v22 = vadd.bf16 %v772_v12, %v707_v11  ;;  %v553_v23 = vmax.bf16 %v1346_v8, %v537_v13  ;;  %v602_v24 = vadd.bf16 %v1487_v49, %v586_v14  ;;  %v667_v25 = vmul.bf16 %v1150_v10, %v1485_v48 }
  0x67   : > { %v789_v26 = vadd.bf16 %v773_v17, %v708_v16  ;;  %v554_v27 = vmax.bf16 %v1346_v8, %v538_v18  ;;  %v603_v28 = vadd.bf16 %v1487_v49, %v587_v19  ;;  %v668_v29 = vmul.bf16 %v1151_v15, %v1485_v48 }
  0x68   : > { %v618_v30 = vmax.bf16 %v1346_v8, %v602_v24  ;;  %v683_v31 = vadd.bf16 %v1487_v49, %v667_v25  ;;  %v748_v32 = vmul.bf16 %v1166_v20, %v1485_v48  ;;  %v749_v33 = vmul.bf16 %v1167_v21, %v1485_v48 }
  0x69   : > { %v1171_v34 = vcombine.low %v788_v22, %v789_v26  ;;  %v619_v35 = vmax.bf16 %v1346_v8, %v603_v28  ;;  %v684_v36 = vadd.bf16 %v1487_v49, %v668_v29 }
  0x6a   : > { %v634_v37 = vadd.bf16 %v618_v30, %v553_v23  ;;  %v699_v38 = vmax.bf16 %v1346_v8, %v683_v31  ;;  %v764_v39 = vadd.bf16 %v1487_v49, %v748_v32  ;;  %v765_v40 = vadd.bf16 %v1487_v49, %v749_v33 }
  0x6b   : > { %1282 = vmatmul.mubr.msk.bf16.gmra.mrb[4].mxu0 %vm839_vm1, %v1171_v34  ;;  %v635_v41 = vadd.bf16 %v619_v35, %v554_v27  ;;  %v700_v42 = vmax.bf16 %v1346_v8, %v684_v36 }
  0x6c   : > { %v715_v43 = vadd.bf16 %v699_v38, %v634_v37  ;;  %v780_v48 = vmax.bf16 %v1346_v8, %v764_v39  ;;  %v781_v44 = vmax.bf16 %v1346_v8, %v765_v40 }
  0x6d   : > { %v716_v45 = vadd.bf16 %v700_v42, %v635_v41 }
  0x6e   : > { %v796_v46 = vadd.bf16 %v780_v48, %v715_v43 }
  0x6f   : > { %v797_v47 = vadd.bf16 %v781_v44, %v716_v45 }
  0x71   : > { %v1175_v50 = vcombine.low %v796_v46, %v797_v47 }
  0x73   : > { %1290 = vmatmul.mubr.msk.bf16.gmra.mrb[4].mxu1 %vm839_vm1, %v1175_v50 }
 0x11f   : > { %v1279_v49 = vpop.f32.mrb[0].mxu0 }
 0x120   : > { %v902_v51 = vpop.f32.mrb[1].mxu0 }
 0x121   : > { %v1280_v52 = vpop.f32.mrb[2].mxu0 }
 0x122   : > { %v1227_v53 = vpack.c.bf16 %v1280_v52, %v1279_v49  ;;  %v905_v8 = vpop.f32.mrb[3].mxu0 }
 0x123   : > { %v1222_v54 = vpack.c.bf16 %v905_v8, %v902_v51 }
 0x124   : > { %1259 = vst [vmem:[%s465_s11 + $0x8] sm:$0xff] %v1227_v53  }
 0x125   : > { %1223 = vst [vmem:[%s465_s11] sm:$0xff] %v1222_v54  }
 0x127   : > { %v1287_v55 = vpop.f32.mrb[0].mxu1 }
 0x128   : > { %v934_v56 = vpop.f32.mrb[1].mxu1 }
 0x129   : > { %v1288_v57 = vpop.f32.mrb[2].mxu1 }
 0x12a   : > { %v1247_v58 = vpack.c.bf16 %v1288_v57, %v1287_v55  ;;  %v937_v59 = vpop.f32.mrb[3].mxu1 }
 0x12b   : > { %v1242_v60 = vpack.c.bf16 %v937_v59, %v934_v56 }
 0x12c   : > { %1263 = vst [vmem:[%s465_s11 + $0x28] sm:$0xff] %v1247_v58  }
 0x12d   : > { %1262 = vst [vmem:[%s465_s11 + $0x20] sm:$0xff] %v1242_v60  }
 0x13e   : > { %v1283_v61 = vpop.f32.mrb[4].mxu0 }
 0x13f   : > { %v918_v62 = vpop.f32.mrb[5].mxu0 }
 0x140   : > { %v1284_v63 = vpop.f32.mrb[6].mxu0 }
 0x141   : > { %v1237_v0 = vpack.c.bf16 %v1284_v63, %v1283_v61  ;;  %v921_v1 = vpop.f32.mrb[7].mxu0 }
 0x142   : > { %v1232_v2 = vpack.c.bf16 %v921_v1, %v918_v62 }
 0x143   : > { %1261 = vst [vmem:[%s465_s11 + $0x18] sm:$0xff] %v1237_v0  }
 0x144   : > { %1260 = vst [vmem:[%s465_s11 + $0x10] sm:$0xff] %v1232_v2  }
 0x146   : > { %v1291_v3 = vpop.f32.mrb[4].mxu1 }
 0x147   : > { %v950_v4 = vpop.f32.mrb[5].mxu1 }
 0x148   : > { %v1292_v5 = vpop.f32.mrb[6].mxu1 }
 0x149   : > { %v1257_v6 = vpack.c.bf16 %v1292_v5, %v1291_v3  ;;  %v953_v7 = vpop.f32.mrb[7].mxu1 }
 0x14a   : > { %v1252_v9 = vpack.c.bf16 %v953_v7, %v950_v4 }
 0x14b   : > { %1265 = vst [vmem:[%s465_s11 + $0x38] sm:$0xff] %v1257_v6  }
 0x14c   : > { %1264 = vst [vmem:[%s465_s11 + $0x30] sm:$0xff] %v1252_v9  }
 0x14d PF: > { %p10_p9 = scmp.ge.s32.totalorder %s1384_s16, 4   ;;  %s1767_s12 = smov %s1340_s13 }
 0x14e   : > { %s1768_s13 = smov %s1393_s19  ;;  %s1769_s14 = smov %s1384_s16 }
 0x14f   :  { %12 = sbr.rel (!%p10_p9) target bundleno = 2 (0x2), region = 111 }

// kernel: transition_forward.2
= control target key start
LH: loop header
LB: loop body
LE: loop exit
PB: predicated region body
PF: predicated region fallthrough
CT: control target
= control target key end

     0   :  { %s1191_s6 = smov 0   ;;  %s1193_s7 = smov 0   ;;  %s1797_s0 = inlined_call_operand.vmem [shape: bf16[4,256,4], index: 0, kind: input, shape index: {}]   ;;  %s1798_s1 = inlined_call_operand.vmem [shape: f32[2,2,4], index: 1, kind: output, shape index: {}]  }
   0x1   :  { %s1195_s8 = smov 0   ;;  %s1197_s9 = smov 0  }
   0x2   :  { %s1199_s10 = smov 0  }
   0x3 LB: > { %s23_s11 = sadd.s32 1, %s1174_s9  ;;  %p39_p1 = scmp.ne.s32.totalorder %s1166_s7, %s1162_s6  ;;  %s1178_s10 = sphi %s1199_s10, %s11_s10   ;;  %s1174_s9 = sphi %s1197_s9, %s1952_s9   ;;  %s1170_s8 = sphi %s1195_s8, %s1951_s8   ;;  %s1166_s7 = sphi %s1193_s7, %s1950_s7   ;;  %s1162_s6 = sphi %s1191_s6, %s1949_s6  }
   0x4   : > { %p25_p0 = scmp.ge.s32.totalorder %s23_s11, 2  ;;  %p40_p2 = scmp.eq.s32.totalorder %s1178_s10, 0 }
   0x5   : > { %s32_s13 = sadd.s32 1, %s1166_s7  ;;  %p882_p5 = scmp.ge.s32.totalorder %s1178_s10, 2 }
   0x6   : > { %s1954_s11 = smov (%p25_p0, %s23_s11), 0  ;;  %p41_p3 = por %p40_p2, %p39_p1 }
   0x7   : > { %s29_s12 = ssub.s32 %s1174_s9, %s1954_s11  ;;  %91 = sbr.rel (%p882_p5) target bundleno = 34 (0x22), region = 16 }
   0x8   : > { %p30_p4 = scmp.eq.s32.totalorder %s29_s12, 0 }
   0xa   : > { %s1226_s14 = scalar_select %p30_p4, %s1166_s7, %s32_s13  }
   0xe   : > { %94 = sbr.rel (!%p41_p3) target bundleno = 34 (0x22), region = 20  ;;  %s96_s15 = sand.u32 (%p41_p3), 1, %s1166_s7  }
   0xf   : > { %s939_s16 = sshll.u32 (%p41_p3), %s1174_s9, 6  ;;  %s883_s17 = sshll.u32 (%p41_p3), %s96_s15, 8 }
  0x10   : > { %s1234_s20 = scalar_lea.vmem (%p41_p3), %s1797_s0, %s939_s16  ;;  %s1239_s21 = scalar_lea.vmem (%p41_p3), [#allocation3], %s883_s17 }
  0x11   : > { %v118_v0 = vld [vmem:[%s1234_s20] sm:$0xff] (%p41_p3)   ;;  %v122_v1 = vld [vmem:[%s1234_s20 + $0x8] sm:$0xff] (%p41_p3)   ;;  %v126_v2 = vld [vmem:[%s1234_s20 + $0x10] sm:$0xff] (%p41_p3)  }
  0x12   : > { %119 = vst [vmem:[%s1239_s21] sm:$0xff] (%p41_p3), %v118_v0   ;;  %123 = vst [vmem:[%s1239_s21 + $0x8] sm:$0xff] (%p41_p3), %v122_v1   ;;  %v130_v3 = vld [vmem:[%s1234_s20 + $0x18] sm:$0xff] (%p41_p3)   ;;  %v134_v4 = vld [vmem:[%s1234_s20 + $0x20] sm:$0xff] (%p41_p3)  }
  0x13   : > { %127 = vst [vmem:[%s1239_s21 + $0x10] sm:$0xff] (%p41_p3), %v126_v2   ;;  %v138_v5 = vld [vmem:[%s1234_s20 + $0x28] sm:$0xff] (%p41_p3)   ;;  %131 = vst [vmem:[%s1239_s21 + $0x18] sm:$0xff] (%p41_p3), %v130_v3   ;;  %v142_v6 = vld [vmem:[%s1234_s20 + $0x30] sm:$0xff] (%p41_p3)  }
  0x14   : > { %135 = vst [vmem:[%s1239_s21 + $0x20] sm:$0xff] (%p41_p3), %v134_v4   ;;  %139 = vst [vmem:[%s1239_s21 + $0x28] sm:$0xff] (%p41_p3), %v138_v5   ;;  %v146_v7 = vld [vmem:[%s1234_s20 + $0x38] sm:$0xff] (%p41_p3)   ;;  %v150_v8 = vld [vmem:[%s1234_s20 + $0x80] sm:$0xff] (%p41_p3)  }
  0x15   : > { %143 = vst [vmem:[%s1239_s21 + $0x30] sm:$0xff] %v142_v6   ;;  %147 = vst [vmem:[%s1239_s21 + $0x38] sm:$0xff] %v146_v7   ;;  %v154_v9 = vld [vmem:[%s1234_s20 + $0x88] sm:$0xff]   ;;  %v158_v10 = vld [vmem:[%s1234_s20 + $0x90] sm:$0xff]  }
  0x16   : > { %151 = vst [vmem:[%s1239_s21 + $0x40] sm:$0xff] %v150_v8   ;;  %v162_v11 = vld [vmem:[%s1234_s20 + $0x98] sm:$0xff]   ;;  %155 = vst [vmem:[%s1239_s21 + $0x48] sm:$0xff] %v154_v9   ;;  %v166_v12 = vld [vmem:[%s1234_s20 + $0xa0] sm:$0xff]  }
  0x17   : > { %159 = vst [vmem:[%s1239_s21 + $0x50] sm:$0xff] %v158_v10   ;;  %163 = vst [vmem:[%s1239_s21 + $0x58] sm:$0xff] %v162_v11   ;;  %v170_v13 = vld [vmem:[%s1234_s20 + $0xa8] sm:$0xff]   ;;  %v174_v14 = vld [vmem:[%s1234_s20 + $0xb0] sm:$0xff]  }
  0x18   : > { %167 = vst [vmem:[%s1239_s21 + $0x60] sm:$0xff] %v166_v12   ;;  %171 = vst [vmem:[%s1239_s21 + $0x68] sm:$0xff] %v170_v13   ;;  %v178_v15 = vld [vmem:[%s1234_s20 + $0xb8] sm:$0xff]   ;;  %v182_v16 = vld [vmem:[%s1234_s20 + $0x100] sm:$0xff]  }
  0x19   : > { %175 = vst [vmem:[%s1239_s21 + $0x70] sm:$0xff] %v174_v14   ;;  %v186_v17 = vld [vmem:[%s1234_s20 + $0x108] sm:$0xff]   ;;  %179 = vst [vmem:[%s1239_s21 + $0x78] sm:$0xff] %v178_v15   ;;  %v190_v18 = vld [vmem:[%s1234_s20 + $0x110] sm:$0xff]  }
  0x1a   : > { %183 = vst [vmem:[%s1239_s21 + $0x80] sm:$0xff] %v182_v16   ;;  %187 = vst [vmem:[%s1239_s21 + $0x88] sm:$0xff] %v186_v17   ;;  %v194_v19 = vld [vmem:[%s1234_s20 + $0x118] sm:$0xff]   ;;  %v198_v20 = vld [vmem:[%s1234_s20 + $0x120] sm:$0xff]  }
  0x1b   : > { %191 = vst [vmem:[%s1239_s21 + $0x90] sm:$0xff] %v190_v18   ;;  %195 = vst [vmem:[%s1239_s21 + $0x98] sm:$0xff] %v194_v19   ;;  %v202_v21 = vld [vmem:[%s1234_s20 + $0x128] sm:$0xff]   ;;  %v206_v22 = vld [vmem:[%s1234_s20 + $0x130] sm:$0xff]  }
  0x1c   : > { %199 = vst [vmem:[%s1239_s21 + $0xa0] sm:$0xff] %v198_v20   ;;  %v210_v23 = vld [vmem:[%s1234_s20 + $0x138] sm:$0xff]   ;;  %203 = vst [vmem:[%s1239_s21 + $0xa8] sm:$0xff] %v202_v21   ;;  %v214_v24 = vld [vmem:[%s1234_s20 + $0x180] sm:$0xff]  }
  0x1d   : > { %207 = vst [vmem:[%s1239_s21 + $0xb0] sm:$0xff] %v206_v22   ;;  %211 = vst [vmem:[%s1239_s21 + $0xb8] sm:$0xff] %v210_v23   ;;  %v218_v25 = vld [vmem:[%s1234_s20 + $0x188] sm:$0xff]   ;;  %v222_v26 = vld [vmem:[%s1234_s20 + $0x190] sm:$0xff]  }
  0x1e   : > { %215 = vst [vmem:[%s1239_s21 + $0xc0] sm:$0xff] %v214_v24   ;;  %219 = vst [vmem:[%s1239_s21 + $0xc8] sm:$0xff] %v218_v25   ;;  %v226_v27 = vld [vmem:[%s1234_s20 + $0x198] sm:$0xff]   ;;  %v230_v28 = vld [vmem:[%s1234_s20 + $0x1a0] sm:$0xff]  }
  0x1f   : > { %223 = vst [vmem:[%s1239_s21 + $0xd0] sm:$0xff] %v222_v26   ;;  %v234_v29 = vld [vmem:[%s1234_s20 + $0x1a8] sm:$0xff]   ;;  %227 = vst [vmem:[%s1239_s21 + $0xd8] sm:$0xff] %v226_v27   ;;  %v238_v30 = vld [vmem:[%s1234_s20 + $0x1b0] sm:$0xff]  }
  0x20   : > { %231 = vst [vmem:[%s1239_s21 + $0xe0] sm:$0xff] %v230_v28   ;;  %235 = vst [vmem:[%s1239_s21 + $0xe8] sm:$0xff] %v234_v29   ;;  %v242_v31 = vld [vmem:[%s1234_s20 + $0x1b8] sm:$0xff]  }
  0x21   : > { %239 = vst [vmem:[%s1239_s21 + $0xf0] sm:$0xff] %v238_v30   ;;  %243 = vst [vmem:[%s1239_s21 + $0xf8] sm:$0xff] %v242_v31  }
  0x22 PF: > { %p886_p6 = scmp.ge.s32.totalorder %s1178_s10, 1  ;;  %p395_p7 = scmp.lt.s32.totalorder %s1178_s10, 3 }
  0x24   : > { %p396_p8 = pnand %p886_p6, %p395_p7 }
  0x26   : > { %399 = sbr.rel (%p396_p8) target bundleno = 157 (0x9d), region = 61 }
  0x2d   : > { %vm430_vm0 = vcmask 25600   ;;  %v1180_v32 = vmov 0.0   ;;  %s402_s22 = sand.u32 1, %s1162_s6   ;;  %vm724_vm1 = vcmask 31744   ;;  %vm763_vm2 = vcmask 24576   ;;  %p422_p9 = scmp.lt.s32.totalorder %s1170_s8, 1 }
  0x2e   : > { %431 = vst.msk [vmem:[#allocation2] sm:$0x3] %vm430_vm0, %v1180_v32  ;;  %s887_s23 = sshll.u32 %s402_s22, 8 }
  0x2f   : > { %s1306_s24 = scalar_lea.vmem [#allocation3], %s887_s23  ;;  %s1956_s8 = smov (!%p422_p9, %s1170_s8), 1 }
  0x30   : > { %v941_v33 = vld [vmem:[%s1306_s24] sm:$0xff]   ;;  %v1068_v34 = vld [vmem:[%s1306_s24 + $0x8] sm:$0xff]   ;;  %v1069_v35 = vld [vmem:[%s1306_s24 + $0x10] sm:$0xff]   ;;  %s888_s25 = sshll.u32 %s1956_s8, 1 }
  0x31   : > { %v1070_v36 = vld [vmem:[%s1306_s24 + $0x18] sm:$0xff]   ;;  %v1071_v37 = vld [vmem:[%s1306_s24 + $0x20] sm:$0xff]   ;;  %v1072_v38 = vld [vmem:[%s1306_s24 + $0x28] sm:$0xff]   ;;  %v1314_v39 = vunpack.c.l.bf16 %v941_v33  ;;  %v1316_v40 = vunpack.c.h.bf16 %v941_v33  ;;  %v1318_v41 = vunpack.c.l.bf16 %v1068_v34  ;;  %v1320_v42 = vunpack.c.h.bf16 %v1068_v34  ;;  %s425_s28 = scalar_lea.vmem %s1798_s1, %s888_s25 }
  0x32   : > { %v1073_v43 = vld [vmem:[%s1306_s24 + $0x30] sm:$0xff]   ;;  %v1074_v44 = vld [vmem:[%s1306_s24 + $0x38] sm:$0xff]   ;;  %v1324_v45 = vunpack.c.l.bf16 %v1069_v35  ;;  %v1326_v46 = vunpack.c.h.bf16 %v1069_v35  ;;  %v1328_v47 = vunpack.c.l.bf16 %v1070_v36  ;;  %v1330_v48 = vunpack.c.h.bf16 %v1070_v36  ;;  %v1075_v49 = vld [vmem:[%s1306_s24 + $0x40] sm:$0xff]  }
  0x33   : > { %v1076_v50 = vld [vmem:[%s1306_s24 + $0x48] sm:$0xff]   ;;  %v1334_v51 = vunpack.c.l.bf16 %v1071_v37  ;;  %v1336_v52 = vunpack.c.h.bf16 %v1071_v37  ;;  %v1338_v53 = vunpack.c.l.bf16 %v1072_v38  ;;  %v1340_v54 = vunpack.c.h.bf16 %v1072_v38  ;;  %v1077_v55 = vld [vmem:[%s1306_s24 + $0x50] sm:$0xff]   ;;  %v1078_v56 = vld [vmem:[%s1306_s24 + $0x58] sm:$0xff]  }
  0x34   : > { %v1344_v57 = vunpack.c.l.bf16 %v1073_v43  ;;  %v1346_v58 = vunpack.c.h.bf16 %v1073_v43  ;;  %v1348_v59 = vunpack.c.l.bf16 %v1074_v44  ;;  %v1350_v60 = vunpack.c.h.bf16 %v1074_v44  ;;  %v1079_v61 = vld [vmem:[%s1306_s24 + $0x60] sm:$0xff]   ;;  %v1080_v62 = vld [vmem:[%s1306_s24 + $0x68] sm:$0xff]   ;;  %v1081_v3 = vld [vmem:[%s1306_s24 + $0x70] sm:$0xff]  }
  0x35   : > { %v1354_v63 = vunpack.c.l.bf16 %v1075_v49  ;;  %v1356_v0 = vunpack.c.h.bf16 %v1075_v49  ;;  %v1358_v1 = vunpack.c.l.bf16 %v1076_v50  ;;  %v1360_v2 = vunpack.c.h.bf16 %v1076_v50  ;;  %v1082_v4 = vld [vmem:[%s1306_s24 + $0x78] sm:$0xff]   ;;  %v1083_v9 = vld [vmem:[%s1306_s24 + $0x80] sm:$0xff]   ;;  %v1084_v10 = vld [vmem:[%s1306_s24 + $0x88] sm:$0xff]  }
  0x36   : > { %v1364_v5 = vunpack.c.l.bf16 %v1077_v55  ;;  %v1366_v6 = vunpack.c.h.bf16 %v1077_v55  ;;  %v1368_v7 = vunpack.c.l.bf16 %v1078_v56  ;;  %v1370_v8 = vunpack.c.h.bf16 %v1078_v56  ;;  %v1085_v15 = vld [vmem:[%s1306_s24 + $0x90] sm:$0xff]   ;;  %v1086_v16 = vld [vmem:[%s1306_s24 + $0x98] sm:$0xff]   ;;  %v1087_v21 = vld [vmem:[%s1306_s24 + $0xa0] sm:$0xff]  }
  0x37   : > { %1842 = vst [vmem:[#allocation4_spill] sm:$0xff] %v1354_v63  ;;  %1843 = vst [vmem:[#allocation5_spill] sm:$0xff] %v1356_v0  ;;  %v1374_v11 = vunpack.c.l.bf16 %v1079_v61  ;;  %v1376_v12 = vunpack.c.h.bf16 %v1079_v61  ;;  %v1378_v13 = vunpack.c.l.bf16 %v1080_v62  ;;  %v1380_v14 = vunpack.c.h.bf16 %v1080_v62  ;;  %v1088_v22 = vld [vmem:[%s1306_s24 + $0xa8] sm:$0xff]   ;;  %v1089_v27 = vld [vmem:[%s1306_s24 + $0xb0] sm:$0xff]  }
  0x38   : > { %1844 = vst [vmem:[#allocation6_spill] sm:$0xff] %v1358_v1  ;;  %1845 = vst [vmem:[#allocation7_spill] sm:$0xff] %v1360_v2  ;;  %v1384_v17 = vunpack.c.l.bf16 %v1081_v3  ;;  %v1386_v18 = vunpack.c.h.bf16 %v1081_v3  ;;  %v1388_v19 = vunpack.c.l.bf16 %v1082_v4  ;;  %v1390_v20 = vunpack.c.h.bf16 %v1082_v4  ;;  %v1090_v28 = vld [vmem:[%s1306_s24 + $0xb8] sm:$0xff]   ;;  %v1091_v33 = vld [vmem:[%s1306_s24 + $0xc0] sm:$0xff]  }
  0x39   : > { %1846 = vst [vmem:[#allocation8_spill] sm:$0xff] %v1364_v5  ;;  %1847 = vst [vmem:[#allocation9_spill] sm:$0xff] %v1366_v6  ;;  %v1394_v23 = vunpack.c.l.bf16 %v1083_v9  ;;  %v1396_v24 = vunpack.c.h.bf16 %v1083_v9  ;;  %v1398_v25 = vunpack.c.l.bf16 %v1084_v10  ;;  %v1400_v26 = vunpack.c.h.bf16 %v1084_v10  ;;  %v1092_v34 = vld [vmem:[%s1306_s24 + $0xc8] sm:$0xff]   ;;  %v1093_v43 = vld [vmem:[%s1306_s24 + $0xd0] sm:$0xff]  }
  0x3a   : > { %1848 = vst [vmem:[#allocation10_spill] sm:$0xff] %v1368_v7  ;;  %1849 = vst [vmem:[#allocation11_spill] sm:$0xff] %v1370_v8  ;;  %v1404_v29 = vunpack.c.l.bf16 %v1085_v15  ;;  %v1406_v30 = vunpack.c.h.bf16 %v1085_v15  ;;  %v1408_v31 = vunpack.c.l.bf16 %v1086_v16  ;;  %v1410_v32 = vunpack.c.h.bf16 %v1086_v16  ;;  %v1094_v44 = vld [vmem:[%s1306_s24 + $0xd8] sm:$0xff]   ;;  %v1095_v61 = vld [vmem:[%s1306_s24 + $0xe0] sm:$0xff]  }
  0x3b   : > { %1850 = vst [vmem:[#allocation12_spill] sm:$0xff] %v1374_v11  ;;  %1851 = vst [vmem:[#allocation13_spill] sm:$0xff] %v1378_v13  ;;  %v1414_v35 = vunpack.c.l.bf16 %v1087_v21  ;;  %v1416_v36 = vunpack.c.h.bf16 %v1087_v21  ;;  %v1418_v37 = vunpack.c.l.bf16 %v1088_v22  ;;  %v1420_v38 = vunpack.c.h.bf16 %v1088_v22  ;;  %v1096_v62 = vld [vmem:[%s1306_s24 + $0xe8] sm:$0xff]   ;;  %v1097_v15 = vld [vmem:[%s1306_s24 + $0xf0] sm:$0xff]  }
  0x3c   : > { %1852 = vst [vmem:[#allocation14_spill] sm:$0xff] %v1380_v14  ;;  %1853 = vst [vmem:[#allocation15_spill] sm:$0xff] %v1384_v17  ;;  %v1424_v49 = vunpack.c.l.bf16 %v1089_v27  ;;  %v1426_v50 = vunpack.c.h.bf16 %v1089_v27  ;;  %v1428_v55 = vunpack.c.l.bf16 %v1090_v28  ;;  %v1430_v56 = vunpack.c.h.bf16 %v1090_v28  ;;  %v1098_v16 = vld [vmem:[%s1306_s24 + $0xf8] sm:$0xff]  }
  0x3d   : > { %1854 = vst [vmem:[#allocation16_spill] sm:$0xff] %v1386_v18  ;;  %1855 = vst [vmem:[#allocation17_spill] sm:$0xff] %v1388_v19  ;;  %v1434_v3 = vunpack.c.l.bf16 %v1091_v33  ;;  %v1436_v4 = vunpack.c.h.bf16 %v1091_v33  ;;  %v1438_v9 = vunpack.c.l.bf16 %v1092_v34  ;;  %v1440_v10 = vunpack.c.h.bf16 %v1092_v34 }
  0x3e   : > { %1856 = vst [vmem:[#allocation18_spill] sm:$0xff] %v1398_v25  ;;  %1857 = vst [vmem:[#allocation19_spill] sm:$0xff] %v1400_v26  ;;  %v1444_v21 = vunpack.c.l.bf16 %v1093_v43  ;;  %v1446_v22 = vunpack.c.h.bf16 %v1093_v43  ;;  %v1448_v27 = vunpack.c.l.bf16 %v1094_v44  ;;  %v1450_v28 = vunpack.c.h.bf16 %v1094_v44 }
  0x3f   : > { %1858 = vst [vmem:[#allocation20_spill] sm:$0xff] %v1404_v29  ;;  %1859 = vst [vmem:[#allocation21_spill] sm:$0xff] %v1406_v30  ;;  %v1456_v33 = vunpack.c.l.bf16 %v1096_v62  ;;  %v1460_v34 = vunpack.c.l.bf16 %v1097_v15  ;;  %v1466_v43 = vunpack.c.h.bf16 %v1098_v16  ;;  %v563_v44 = vadd.f32 %v1354_v63, %v1314_v39 }
  0x40   : > { %1860 = vst [vmem:[#allocation22_spill] sm:$0xff] %v1408_v31  ;;  %1861 = vst [vmem:[#allocation23_spill] sm:$0xff] %v1410_v32  ;;  %v570_v63 = vadd.f32 %v1370_v8, %v1330_v48  ;;  %v1498_v8 = vadd.f32 %v1388_v19, %v1348_v59  ;;  %v583_v19 = vadd.f32 %v1444_v21, %v1404_v29 }
  0x41   : > { %1862 = vst [vmem:[#allocation24_spill] sm:$0xff] %v1414_v35  ;;  %1863 = vst [vmem:[#allocation25_spill] sm:$0xff] %v1418_v37  ;;  %v564_v37 = vadd.f32 %v1356_v0, %v1316_v40  ;;  %v571_v0 = vadd.f32 %v1374_v11, %v1334_v51  ;;  %v1502_v11 = vadd.f32 %v1390_v20, %v1350_v60 }
  0x42   : > { %1864 = vst [vmem:[#allocation26_spill] sm:$0xff] %v1420_v38  ;;  %1865 = vst [vmem:[#allocation27_spill] sm:$0xff] %v1424_v49  ;;  %v1462_v49 = vunpack.c.h.bf16 %v1097_v15  ;;  %v1464_v38 = vunpack.c.l.bf16 %v1098_v16  ;;  %v567_v15 = vadd.f32 %v1364_v5, %v1324_v45  ;;  %v569_v16 = vadd.f32 %v1368_v7, %v1328_v47 }
  0x43   : > { %1866 = vst [vmem:[#allocation28_spill] sm:$0xff] %v1426_v50  ;;  %1867 = vst [vmem:[#allocation29_spill] sm:$0xff] %v1428_v55  ;;  %v1454_v55 = vunpack.c.h.bf16 %v1095_v61  ;;  %v1458_v50 = vunpack.c.h.bf16 %v1096_v62  ;;  %v566_v62 = vadd.f32 %v1360_v2, %v1320_v42  ;;  %v573_v2 = vadd.f32 %v1378_v13, %v1338_v53 }
  0x44   : > { %1868 = vst [vmem:[#allocation30_spill] sm:$0xff] %v1430_v56  ;;  %1869 = vst [vmem:[#allocation31_spill] sm:$0xff] %v1434_v3  ;;  %v1452_v56 = vunpack.c.l.bf16 %v1095_v61  ;;  %v565_v61 = vadd.f32 %v1358_v1, %v1318_v41  ;;  %v572_v1 = vadd.f32 %v1376_v12, %v1336_v52  ;;  %v574_v5 = vadd.f32 %v1380_v14, %v1340_v54 }
  0x45   : > { %1870 = vst [vmem:[#allocation32_spill] sm:$0xff] %v1436_v4  ;;  %1871 = vst [vmem:[#allocation33_spill] sm:$0xff] %v1438_v9  ;;  %v576_v7 = vadd.f32 %v1386_v18, %v1346_v58  ;;  %v579_v13 = vadd.f32 %v1434_v3, %v1394_v23  ;;  %v580_v14 = vadd.f32 %v1436_v4, %v1396_v24 }
  0x46   : > { %1872 = vst [vmem:[#allocation34_spill] sm:$0xff] %v1440_v10  ;;  %1873 = vst [vmem:[#allocation35_spill] sm:$0xff] %v1444_v21  ;;  %v582_v18 = vadd.f32 %v1440_v10, %v1400_v26  ;;  %v586_v3 = vadd.f32 %v1450_v28, %v1410_v32  ;;  %v587_v4 = vadd.f32 %v1452_v56, %v1414_v35 }
  0x47   : > { %1874 = vst [vmem:[#allocation36_spill] sm:$0xff] %v1446_v22  ;;  %1875 = vst [vmem:[#allocation37_spill] sm:$0xff] %v1448_v27 }
  0x48   : > { %1876 = vst [vmem:[#allocation38_spill] sm:$0xff] %v1450_v28  ;;  %1877 = vst [vmem:[#allocation39_spill] sm:$0xff] %v1452_v56 }
  0x49   : > { %1878 = vst [vmem:[#allocation40_spill] sm:$0xff] %v1454_v55  ;;  %1879 = vst [vmem:[#allocation41_spill] sm:$0xff] %v1456_v33  ;;  %v1888_v26 = vld [vmem:[#allocation26_spill] sm:$0xff]  ;;  %v1889_v29 = vld [vmem:[#allocation27_spill] sm:$0xff] }
  0x4a   : > { %1880 = vst [vmem:[#allocation42_spill] sm:$0xff] %v1458_v50  ;;  %1881 = vst [vmem:[#allocation43_spill] sm:$0xff] %v1460_v34  ;;  %v590_v21 = vadd.f32 %v1458_v50, %v1888_v26  ;;  %v1546_v50 = vadd.f32 %v582_v18, %v566_v62  ;;  %v1909_v62 = vld [vmem:[#allocation14_spill] sm:$0xff] }
  0x4b   : > { %1882 = vst [vmem:[#allocation44_spill] sm:$0xff] %v1462_v49  ;;  %1883 = vst [vmem:[#allocation45_spill] sm:$0xff] %v1464_v38  ;;  %v568_v38 = vadd.f32 %v1366_v6, %v1326_v46  ;;  %v575_v6 = vadd.f32 %v1384_v17, %v1344_v57  ;;  %v581_v17 = vadd.f32 %v1438_v9, %v1398_v25  ;;  %v1887_v25 = vld [vmem:[#allocation25_spill] sm:$0xff]  ;;  %v1894_v56 = vld [vmem:[#allocation30_spill] sm:$0xff] }
  0x4c   : > { %1884 = vst [vmem:[#allocation46_spill] sm:$0xff] %v1466_v43  ;;  %1885 = vst [vmem:[#allocation47_spill] sm:$0xff] %v1498_v8  ;;  %v584_v8 = vadd.f32 %v1446_v22, %v1406_v30  ;;  %v588_v9 = vadd.f32 %v1454_v55, %v1416_v36  ;;  %v589_v10 = vadd.f32 %v1456_v33, %v1887_v25  ;;  %v1890_v30 = vld [vmem:[#allocation28_spill] sm:$0xff] }
  0x4d   : > { %1886 = vst [vmem:[#allocation48_spill] sm:$0xff] %v1502_v11  ;;  %v585_v11 = vadd.f32 %v1448_v27, %v1408_v31  ;;  %v591_v22 = vadd.f32 %v1460_v34, %v1889_v29  ;;  %v592_v27 = vadd.f32 %v1462_v49, %v1890_v30  ;;  %v1891_v31 = vld [vmem:[#allocation29_spill] sm:$0xff]  ;;  %v1538_v35 = vadd.f32 %v1466_v43, %v1894_v56 }
  0x4e   : > { %v1540_v55 = vadd.f32 %v579_v13, %v563_v44  ;;  %v1542_v33 = vadd.f32 %v580_v14, %v564_v37  ;;  %v1544_v25 = vadd.f32 %v581_v17, %v565_v61  ;;  %v1548_v34 = vadd.f32 %v583_v19, %v567_v15  ;;  %v1902_v19 = vld [vmem:[#allocation7_spill] sm:$0xff]  ;;  %v1903_v37 = vld [vmem:[#allocation8_spill] sm:$0xff]  ;;  %v1908_v44 = vld [vmem:[#allocation13_spill] sm:$0xff] }
  0x4f   : > { %1895 = vst [vmem:[#allocation28_spill] sm:$0xff] %v1538_v35  ;;  %v1550_v29 = vadd.f32 %v584_v8, %v568_v38  ;;  %v1552_v49 = vadd.f32 %v585_v11, %v569_v16  ;;  %v1558_v43 = vadd.f32 %v588_v9, %v572_v1  ;;  %v1560_v13 = vadd.f32 %v589_v10, %v573_v2  ;;  %v1904_v38 = vld [vmem:[#allocation9_spill] sm:$0xff]  ;;  %v1906_v9 = vld [vmem:[#allocation11_spill] sm:$0xff] }
  0x50   : > { %v1562_v14 = vadd.f32 %v590_v21, %v574_v5  ;;  %v1564_v17 = vadd.f32 %v591_v22, %v575_v6  ;;  %v1566_v18 = vadd.f32 %v592_v27, %v576_v7  ;;  %v611_v8 = vmul.f32 %v1314_v39, %v1314_v39  ;;  %v1900_v6 = vld [vmem:[#allocation5_spill] sm:$0xff]  ;;  %v1901_v7 = vld [vmem:[#allocation6_spill] sm:$0xff]  ;;  %v1907_v21 = vld [vmem:[#allocation12_spill] sm:$0xff] }
  0x51   : > { %v612_v11 = vmul.f32 %v1316_v40, %v1316_v40  ;;  %v615_v1 = vmul.f32 %v1324_v45, %v1324_v45  ;;  %v616_v2 = vmul.f32 %v1326_v46, %v1326_v46  ;;  %v617_v5 = vmul.f32 %v1328_v47, %v1328_v47  ;;  %v1910_v16 = vld [vmem:[#allocation15_spill] sm:$0xff] }
  0x52   : > { %v1892_v28 = vld [vmem:[#allocation45_spill] sm:$0xff]  ;;  %1896 = vst [vmem:[#allocation29_spill] sm:$0xff] %v1564_v17  ;;  %1897 = vst [vmem:[#allocation30_spill] sm:$0xff] %v1566_v18  ;;  %v618_v39 = vmul.f32 %v1330_v48, %v1330_v48  ;;  %v619_v40 = vmul.f32 %v1334_v51, %v1334_v51  ;;  %v622_v45 = vmul.f32 %v1340_v54, %v1340_v54 }
  0x53   : > { %v1534_v32 = vadd.f32 %v1892_v28, %v1891_v31  ;;  %v1554_v28 = vadd.f32 %v586_v3, %v570_v63  ;;  %v613_v63 = vmul.f32 %v1318_v41, %v1318_v41  ;;  %v620_v41 = vmul.f32 %v1336_v52, %v1336_v52  ;;  %v1899_v52 = vld [vmem:[#allocation4_spill] sm:$0xff] }
  0x54   : > { %v623_v46 = vmul.f32 %v1344_v57, %v1344_v57  ;;  %v624_v47 = vmul.f32 %v1346_v58, %v1346_v58  ;;  %v1598_v48 = vmul.f32 %v1348_v59, %v1348_v59  ;;  %v1602_v51 = vmul.f32 %v1350_v60, %v1350_v60  ;;  %v1905_v60 = vld [vmem:[#allocation10_spill] sm:$0xff] }
  0x55   : > { %1893 = vst [vmem:[#allocation26_spill] sm:$0xff] %v1534_v32  ;;  %v1556_v32 = vadd.f32 %v587_v4, %v571_v0  ;;  %v614_v0 = vmul.f32 %v1320_v42, %v1320_v42  ;;  %v621_v42 = vmul.f32 %v1338_v53, %v1338_v53  ;;  %v627_v53 = vmul.f32 %v1899_v52, %v1899_v52 }
  0x56   : > { %1898 = vst [vmem:[#allocation49_spill] sm:$0xff] %v1602_v51  ;;  %v628_v54 = vmul.f32 %v1900_v6, %v1900_v6  ;;  %v629_v57 = vmul.f32 %v1901_v7, %v1901_v7  ;;  %v630_v58 = vmul.f32 %v1902_v19, %v1902_v19  ;;  %v631_v59 = vmul.f32 %v1903_v37, %v1903_v37  ;;  %v1911_v6 = vld [vmem:[#allocation16_spill] sm:$0xff]  ;;  %v1912_v19 = vld [vmem:[#allocation17_spill] sm:$0xff]  ;;  %v1917_v51 = vld [vmem:[#allocation18_spill] sm:$0xff] }
  0x57   : > { %v632_v3 = vmul.f32 %v1904_v38, %v1904_v38  ;;  %v633_v4 = vmul.f32 %v1905_v60, %v1905_v60  ;;  %v634_v10 = vmul.f32 %v1906_v9, %v1906_v9  ;;  %v635_v22 = vmul.f32 %v1907_v21, %v1907_v21  ;;  %v1915_v60 = vld [vmem:[#allocation31_spill] sm:$0xff] }
  0x58   : > { %v636_v27 = vmul.f32 %v1376_v12, %v1376_v12  ;;  %v637_v61 = vmul.f32 %v1908_v44, %v1908_v44  ;;  %v638_v15 = vmul.f32 %v1909_v62, %v1909_v62  ;;  %v639_v52 = vmul.f32 %v1910_v16, %v1910_v16  ;;  %v1916_v16 = vld [vmem:[#allocation32_spill] sm:$0xff] }
  0x59   : > { %v640_v7 = vmul.f32 %v1911_v6, %v1911_v6  ;;  %v1634_v37 = vmul.f32 %v1912_v19, %v1912_v19  ;;  %v1638_v12 = vmul.f32 %v1390_v20, %v1390_v20  ;;  %v659_v38 = vmul.f32 %v1394_v23, %v1394_v23 }
  0x5a   : > { %v675_v9 = vmul.f32 %v1915_v60, %v1915_v60  ;;  %v643_v21 = vadd.f32 %v627_v53, %v611_v8  ;;  %v644_v44 = vadd.f32 %v628_v54, %v612_v11  ;;  %v660_v62 = vmul.f32 %v1396_v24, %v1396_v24  ;;  %v1920_v11 = vld [vmem:[#allocation34_spill] sm:$0xff]  ;;  %v1921_v54 = vld [vmem:[#allocation20_spill] sm:$0xff] }
  0x5b   : > { %1913 = vst [vmem:[#allocation4_spill] sm:$0xff] %v1634_v37  ;;  %1914 = vst [vmem:[#allocation5_spill] sm:$0xff] %v1638_v12  ;;  %v676_v6 = vmul.f32 %v1916_v16, %v1916_v16  ;;  %v645_v19 = vadd.f32 %v629_v57, %v613_v63  ;;  %v646_v18 = vadd.f32 %v630_v58, %v614_v0  ;;  %v1918_v12 = vld [vmem:[#allocation33_spill] sm:$0xff]  ;;  %v1919_v37 = vld [vmem:[#allocation19_spill] sm:$0xff] }
  0x5c   : > { %v661_v20 = vmul.f32 %v1917_v51, %v1917_v51  ;;  %v677_v35 = vmul.f32 %v1918_v12, %v1918_v12  ;;  %v647_v23 = vadd.f32 %v631_v59, %v615_v1  ;;  %v648_v17 = vadd.f32 %v632_v3, %v616_v2  ;;  %v1922_v63 = vld [vmem:[#allocation35_spill] sm:$0xff] }
  0x5d   : > { %v662_v8 = vmul.f32 %v1919_v37, %v1919_v37  ;;  %v678_v53 = vmul.f32 %v1920_v11, %v1920_v11  ;;  %v649_v24 = vadd.f32 %v633_v4, %v617_v5  ;;  %v663_v60 = vmul.f32 %v1921_v54, %v1921_v54  ;;  %v1923_v37 = vld [vmem:[#allocation21_spill] sm:$0xff]  ;;  %v1924_v11 = vld [vmem:[#allocation36_spill] sm:$0xff] }
  0x5e   : > { %v679_v0 = vmul.f32 %v1922_v63, %v1922_v63  ;;  %v691_v57 = vadd.f32 %v675_v9, %v659_v38  ;;  %v650_v51 = vadd.f32 %v634_v10, %v618_v39  ;;  %v1660_v58 = vadd.f32 %v635_v22, %v619_v40  ;;  %v1925_v10 = vld [vmem:[#allocation22_spill] sm:$0xff]  ;;  %v1926_v22 = vld [vmem:[#allocation37_spill] sm:$0xff] }
  0x5f   : > { %v1662_v12 = vadd.f32 %v636_v27, %v620_v41  ;;  %v692_v1 = vadd.f32 %v676_v6, %v660_v62  ;;  %v1664_v2 = vadd.f32 %v637_v61, %v621_v42  ;;  %v1666_v59 = vadd.f32 %v638_v15, %v622_v45  ;;  %v1927_v15 = vld [vmem:[#allocation23_spill] sm:$0xff]  ;;  %v1929_v6 = vld [vmem:[#allocation38_spill] sm:$0xff] }
  0x60   : > { %v1668_v3 = vadd.f32 %v639_v52, %v623_v46  ;;  %v693_v5 = vadd.f32 %v677_v35, %v661_v20  ;;  %v1670_v4 = vadd.f32 %v640_v7, %v624_v47  ;;  %v664_v16 = vmul.f32 %v1923_v37, %v1923_v37  ;;  %v1928_v7 = vld [vmem:[#allocation24_spill] sm:$0xff] }
  0x61   : > { %v680_v39 = vmul.f32 %v1924_v11, %v1924_v11  ;;  %v694_v40 = vadd.f32 %v678_v53, %v662_v8  ;;  %v665_v41 = vmul.f32 %v1925_v10, %v1925_v10  ;;  %v681_v42 = vmul.f32 %v1926_v22, %v1926_v22  ;;  %v1932_v11 = vld [vmem:[#allocation25_spill] sm:$0xff] }
  0x62   : > { %v695_v45 = vadd.f32 %v679_v0, %v663_v60  ;;  %v707_v27 = vadd.f32 %v691_v57, %v643_v21  ;;  %v708_v46 = vadd.f32 %v692_v1, %v644_v44  ;;  %v725_v35 = vsel %vm724_vm1, %v1540_v55, 0.0 }
  0x63   : > { %v726_v47 = vsel %vm724_vm1, %v1542_v33, 0.0  ;;  %v728_v61 = vsel %vm724_vm1, %v1544_v25, 0.0  ;;  %v666_v52 = vmul.f32 %v1927_v15, %v1927_v15  ;;  %v667_v38 = vmul.f32 %v1928_v7, %v1928_v7  ;;  %v1930_v25 = vld [vmem:[#allocation39_spill] sm:$0xff] }
  0x64   : > { %v709_v9 = vadd.f32 %v693_v5, %v645_v19  ;;  %v727_v62 = vadd.f32 %v726_v47, %v725_v35  ;;  %v682_v21 = vmul.f32 %v1929_v6, %v1929_v6  ;;  %v696_v44 = vadd.f32 %v680_v39, %v664_v16  ;;  %v1933_v39 = vld [vmem:[#allocation41_spill] sm:$0xff]  ;;  %v1935_v7 = vld [vmem:[#allocation27_spill] sm:$0xff] }
  0x65   : > { %v710_v20 = vadd.f32 %v694_v40, %v646_v18  ;;  %v730_v55 = vsel %vm724_vm1, %v1546_v50, 0.0  ;;  %v668_v33 = vmul.f32 %v1416_v36, %v1416_v36  ;;  %v683_v8 = vmul.f32 %v1930_v25, %v1930_v25  ;;  %v1931_v18 = vld [vmem:[#allocation40_spill] sm:$0xff] }
  0x66   : > { %v697_v53 = vadd.f32 %v681_v42, %v665_v41  ;;  %v729_v54 = vadd.f32 %v728_v61, %v727_v62  ;;  %v711_v60 = vadd.f32 %v695_v45, %v647_v23  ;;  %v732_v19 = vsel %vm724_vm1, %v1548_v34, 0.0 }
  0x67   : > { %v766_v63 = vsel %vm724_vm1, %v707_v27, 0.0  ;;  %v767_v0 = vsel %vm724_vm1, %v708_v46, 0.0  ;;  %v684_v57 = vmul.f32 %v1931_v18, %v1931_v18  ;;  %v769_v36 = vsel %vm724_vm1, %v709_v9, 0.0  ;;  %v1934_v27 = vld [vmem:[#allocation42_spill] sm:$0xff] }
  0x68   : > { %v731_v50 = vadd.f32 %v730_v55, %v729_v54  ;;  %v768_v1 = vadd.f32 %v767_v0, %v766_v63  ;;  %v698_v5 = vadd.f32 %v682_v21, %v666_v52  ;;  %v712_v37 = vadd.f32 %v696_v44, %v648_v17 }
  0x69   : > { %v734_v16 = vsel %vm724_vm1, %v1550_v29, 0.0  ;;  %v771_v23 = vsel %vm724_vm1, %v710_v20, 0.0  ;;  %v669_v34 = vmul.f32 %v1932_v11, %v1932_v11  ;;  %v685_v40 = vmul.f32 %v1933_v39, %v1933_v39  ;;  %v1937_v20 = vld [vmem:[#allocation44_spill] sm:$0xff] }
  0x6a   : > { %v733_v10 = vadd.f32 %v732_v19, %v731_v50  ;;  %v770_v41 = vadd.f32 %v769_v36, %v768_v1  ;;  %v699_v22 = vadd.f32 %v683_v8, %v667_v38  ;;  %v713_v42 = vadd.f32 %v697_v53, %v649_v24  ;;  %v1936_v38 = vld [vmem:[#allocation43_spill] sm:$0xff]  ;;  %v1939_v50 = vld [vmem:[#allocation46_spill] sm:$0xff] }
  0x6b   : > { %v736_v45 = vsel %vm724_vm1, %v1552_v49, 0.0  ;;  %v773_v17 = vsel %vm724_vm1, %v711_v60, 0.0  ;;  %v670_v29 = vmul.f32 %v1888_v26, %v1888_v26  ;;  %v686_v46 = vmul.f32 %v1934_v27, %v1934_v27  ;;  %v1938_v60 = vld [vmem:[#allocation45_spill] sm:$0xff] }
  0x6c   : > { %v735_v35 = vadd.f32 %v734_v16, %v733_v10  ;;  %v772_v47 = vadd.f32 %v771_v23, %v770_v41  ;;  %v700_v61 = vadd.f32 %v684_v57, %v668_v33  ;;  %v714_v15 = vadd.f32 %v698_v5, %v650_v51  ;;  %v1940_v23 = vld [vmem:[#allocation47_spill] sm:$0xff]  ;;  %v1947_v27 = vld [vmem:[#allocation5_spill] sm:$0xff] }
  0x6d   : > { %v738_v52 = vsel %vm724_vm1, %v1554_v28, 0.0  ;;  %v775_v24 = vsel %vm724_vm1, %v712_v37, 0.0  ;;  %v671_v49 = vmul.f32 %v1935_v7, %v1935_v7  ;;  %v687_v9 = vmul.f32 %v1936_v38, %v1936_v38 }
  0x6e   : > { %v737_v62 = vadd.f32 %v736_v45, %v735_v35  ;;  %v774_v26 = vadd.f32 %v773_v17, %v772_v47  ;;  %v701_v6 = vadd.f32 %v685_v40, %v669_v34  ;;  %v715_v21 = vadd.f32 %v699_v22, %v1660_v58  ;;  %v1942_v34 = vld [vmem:[#allocation4_spill] sm:$0xff]  ;;  %v1943_v22 = vld [vmem:[#allocation29_spill] sm:$0xff] }
  0x6f   : > { %v740_v44 = vsel %vm724_vm1, %v1556_v32, 0.0  ;;  %v777_v51 = vsel %vm724_vm1, %v713_v42, 0.0  ;;  %v672_v28 = vmul.f32 %v1890_v30, %v1890_v30  ;;  %v688_v55 = vmul.f32 %v1937_v20, %v1937_v20  ;;  %v1944_v45 = vld [vmem:[#allocation48_spill] sm:$0xff] }
  0x70   : > { %v739_v33 = vadd.f32 %v738_v52, %v737_v62  ;;  %v776_v25 = vadd.f32 %v775_v24, %v774_v26  ;;  %v702_v8 = vadd.f32 %v686_v46, %v670_v29  ;;  %v716_v53 = vadd.f32 %v700_v61, %v1662_v12  ;;  %v1946_v29 = vld [vmem:[#allocation49_spill] sm:$0xff] }
  0x71   : > { %v742_v54 = vsel %vm724_vm1, %v1558_v43, 0.0  ;;  %v779_v58 = vsel %vm724_vm1, %v714_v15, 0.0  ;;  %v673_v32 = vmul.f32 %v1891_v31, %v1891_v31  ;;  %v689_v19 = vmul.f32 %v1938_v60, %v1938_v60  ;;  %v1948_v15 = vld [vmem:[#allocation30_spill] sm:$0xff] }
  0x72   : > { %v741_v30 = vadd.f32 %v740_v44, %v739_v33  ;;  %v778_v63 = vadd.f32 %v777_v51, %v776_v25  ;;  %v703_v0 = vadd.f32 %v687_v9, %v671_v49  ;;  %v717_v18 = vadd.f32 %v701_v6, %v1664_v2 }
  0x73   : > { %v744_v57 = vsel %vm724_vm1, %v1560_v13, 0.0  ;;  %v781_v12 = vsel %vm724_vm1, %v715_v21, 0.0  ;;  %v674_v43 = vmul.f32 %v1894_v56, %v1894_v56  ;;  %v690_v1 = vmul.f32 %v1939_v50, %v1939_v50  ;;  %v1941_v13 = vld [vmem:[#allocation26_spill] sm:$0xff]  ;;  %v765_v50 = vld [vmem:[#allocation2 + $0x1] sm:$0x1] }
  0x74   : > { %v743_v31 = vadd.f32 %v742_v54, %v741_v30  ;;  %v780_v36 = vadd.f32 %v779_v58, %v778_v63  ;;  %v704_v5 = vadd.f32 %v688_v55, %v672_v28  ;;  %v718_v37 = vadd.f32 %v702_v8, %v1666_v59 }
  0x75   : > { %v746_v16 = vsel %vm724_vm1, %v1562_v14, 0.0  ;;  %v783_v2 = vsel %vm724_vm1, %v716_v53, 0.0  ;;  %v609_v11 = vadd.f32 %v1941_v13, %v1940_v23  ;;  %v657_v39 = vadd.f32 %v1942_v34, %v1598_v48  ;;  %v1945_v14 = vld [vmem:[#allocation28_spill] sm:$0xff] }
  0x76   : > { %v745_v56 = vadd.f32 %v744_v57, %v743_v31  ;;  %v782_v40 = vadd.f32 %v781_v12, %v780_v36  ;;  %v705_v10 = vadd.f32 %v689_v19, %v673_v32  ;;  %v719_v41 = vadd.f32 %v703_v0, %v1668_v3  ;;  %v723_v0 = vld [vmem:[#allocation2] sm:$0x1] }
  0x77   : > { %v748_v42 = vsel %vm724_vm1, %v1943_v22, 0.0  ;;  %v785_v59 = vsel %vm724_vm1, %v717_v18, 0.0  ;;  %v610_v17 = vadd.f32 %v1945_v14, %v1944_v45  ;;  %v658_v46 = vadd.f32 %v1947_v27, %v1946_v29 }
  0x78   : > { %v747_v35 = vadd.f32 %v746_v16, %v745_v56  ;;  %v784_v47 = vadd.f32 %v783_v2, %v782_v40  ;;  %v706_v61 = vadd.f32 %v690_v1, %v674_v43  ;;  %v720_v48 = vadd.f32 %v704_v5, %v1670_v4 }
  0x79   : > { %v750_v52 = vsel %vm724_vm1, %v1948_v15, 0.0  ;;  %v787_v3 = vsel %vm724_vm1, %v718_v37, 0.0  ;;  %v721_v49 = vadd.f32 %v705_v10, %v657_v39  ;;  %v752_v38 = vsel %vm724_vm1, %v609_v11, 0.0 }
  0x7a   : > { %v749_v24 = vadd.f32 %v748_v42, %v747_v35  ;;  %v786_v7 = vadd.f32 %v785_v59, %v784_v47  ;;  %v789_v9 = vsel %vm724_vm1, %v719_v41, 0.0  ;;  %v722_v6 = vadd.f32 %v706_v61, %v658_v46 }
  0x7b   : > { %v754_v21 = vsel %vm724_vm1, %v610_v17, 0.0  ;;  %v791_v44 = vsel %vm724_vm1, %v720_v48, 0.0  ;;  %v793_v28 = vsel %vm724_vm1, %v721_v49, 0.0 }
  0x7c   : > { %v751_v62 = vadd.f32 %v750_v52, %v749_v24  ;;  %v788_v26 = vadd.f32 %v787_v3, %v786_v7  ;;  %v795_v33 = vsel %vm724_vm1, %v722_v6, 0.0 }
  0x7e   : > { %v753_v4 = vadd.f32 %v752_v38, %v751_v62  ;;  %v790_v51 = vadd.f32 %v789_v9, %v788_v26 }
  0x80   : > { %v755_v20 = vadd.f32 %v754_v21, %v753_v4  ;;  %v792_v55 = vadd.f32 %v791_v44, %v790_v51 }
  0x82   : > { %v756_v25 = vrot.slane %v755_v20, 4  ;;  %v794_v8 = vadd.f32 %v793_v28, %v792_v55 }
  0x84   : > { %v757_v53 = vadd.f32 %v756_v25, %v755_v20  ;;  %v796_v54 = vadd.f32 %v795_v33, %v794_v8 }
  0x86   : > { %v758_v58 = vrot.slane %v757_v53, 2  ;;  %v797_v32 = vrot.slane %v796_v54, 4 }
  0x88   : > { %v759_v60 = vadd.f32 %v758_v58, %v757_v53  ;;  %v798_v19 = vadd.f32 %v797_v32, %v796_v54 }
  0x8a   : > { %v760_v30 = vrot.slane %v759_v60, 1  ;;  %v799_v63 = vrot.slane %v798_v19, 2 }
  0x8c   : > { %v761_v18 = vadd.f32 %v760_v30, %v759_v60  ;;  %v800_v57 = vadd.f32 %v799_v63, %v798_v19 }
  0x8e   : > { %v762_v12 = vadd.f32 %v761_v18, %v723_v0  ;;  %v801_v43 = vrot.slane %v800_v57, 1 }
  0x90   : > { %764 = vst.msk [vmem:[#allocation2] sm:$0x1] %vm763_vm2, %v762_v12  ;;  %v802_v1 = vadd.f32 %v801_v43, %v800_v57 }
  0x92   : > { %v803_v31 = vadd.f32 %v802_v1, %v765_v50 }
  0x94   : > { %804 = vst.msk [vmem:[#allocation2 + $0x1] sm:$0x1] %vm763_vm2, %v803_v31 }
  0x9b   : > { %v808_v36 = vld [vmem:[#allocation2] sm:$0x3] }
  0x9c   : > { %810 = vst.msk [vmem:[%s425_s28] sm:$0x3] %vm430_vm0, %v808_v36 }
  0x9d PF: > { %s11_s10 = sadd.s32 1, %s1178_s10   ;;  %s1949_s6 = smov %s1166_s7 }
  0x9e   : > { %p8_p10 = scmp.ge.s32.totalorder %s11_s10, 4   ;;  %s1950_s7 = smov %s1226_s14 }
  0x9f   : > { %s1951_s8 = smov %s1174_s9  ;;  %s1952_s9 = smov %s1954_s11 }
  0xa0   :  { %10 = sbr.rel (!%p8_p10) target bundleno = 3 (0x3), region = 111 }

</bundles_post_ra>
